<compile_context>
chip_gen: v7x
topology: tpu7x:2x2x1
jax: 0.10.0
libtpu: 0.0.40
codegen_flags: <defaults>
</compile_context>

<pallas_src>
import math

import jax
import jax.numpy as jnp
from jax.experimental import pallas as pl
from jax.experimental.pallas import tpu as pltpu


# ---------------------------------------------------------------------------
# Kernel body (shared by tiled and full-slab paths)
# ---------------------------------------------------------------------------

def _transpose_tile_kernel(x_ref, o_ref):
    # x_ref: (tc, tt) VMEM tile, o_ref: (tt, tc) VMEM tile.  Leading batch dim
    # is squeezed away by pl.Squeezed(), so this is a plain 2-D XLU transpose.
    o_ref[...] = x_ref[...].T


# ---------------------------------------------------------------------------
# Tiling policy
# ---------------------------------------------------------------------------

_SMALL_SLAB_BYTES = 2 * 1024 * 1024  # per-batch slab size allowed on fallback


def _tile_targets(itemsize):
    """(target_c, target_t): ~4 MiB tiles with >=2 KiB row segments each side."""
    if itemsize >= 4:
        return 1024, 1024      # f32: 4 KiB segments, 4 MiB tile
    if itemsize == 2:
        return 1024, 2048      # bf16: 2/4 KiB segments, 4 MiB tile
    return 2048, 2048          # int8/fp8: 2 KiB segments, 4 MiB tile


def _round_up(x, m):
    return (x + m - 1) // m * m


def _largest_tile(dim, target):
    """Largest multiple of 128 that divides `dim` (a 128-multiple) and <= target."""
    t = min(target, dim)
    t -= t % 128
    while t >= 128 and dim % t:
        t -= 128
    return max(t, 128)


def _plan_padded_dim(dim, target):
    """For dims we pad anyway: (padded_dim, tile) with a decent-sized tile."""
    d = _round_up(dim, 128)
    if d <= target:
        return d, d
    floor = min(512, target)
    t = _largest_tile(d, target)
    if t >= floor:
        return d, t
    # Awkward factorization (e.g. 13*128): pad a bit further so a >=512 tile
    # divides — we are already paying the pad copy, keep the tiles lane-dense.
    d = _round_up(dim, floor)
    return d, _largest_tile(d, target)


# ---------------------------------------------------------------------------
# pallas_call wrappers
# ---------------------------------------------------------------------------

def _transpose_last_3d_tiled(x, tc, tt):
    B, C, T = x.shape
    assert C % tc == 0 and T % tt == 0
    # C-block index (i) innermost: output writebacks stream along the lane
    # (C) axis contiguously; input reads take the strided hops instead.
    grid = (B, T // tt, C // tc)
    return pl.pallas_call(
        _transpose_tile_kernel,
        out_shape=jax.ShapeDtypeStruct((B, T, C), x.dtype),
        grid_spec=pltpu.PrefetchScalarGridSpec(
            num_scalar_prefetch=0,
            grid=grid,
            # Input tile (tc, tt) and output tile (tt, tc): both lane dims are
            # 128-multiples -> lane-dense, unmasked vld/vst on both sides.
            in_specs=[pl.BlockSpec((pl.Squeezed(), tc, tt),
                                   lambda b, j, i: (b, i, j))],
            out_specs=pl.BlockSpec((pl.Squeezed(), tt, tc),
                                   lambda b, j, i: (b, j, i)),
        ),
        compiler_params=pltpu.CompilerParams(
            dimension_semantics=("parallel", "parallel", "parallel"),
            vmem_limit_bytes=40 * 1024 * 1024,
        ),
    )(x)


def _transpose_last_3d_full(x):
    # Fallback for small, lane-sparse slabs only (router guarantees the slab
    # is <= _SMALL_SLAB_BYTES, so double-buffered in+out stays tiny).
    B, C, T = x.shape
    return pl.pallas_call(
        _transpose_tile_kernel,
        out_shape=jax.ShapeDtypeStruct((B, T, C), x.dtype),
        grid_spec=pltpu.PrefetchScalarGridSpec(
            num_scalar_prefetch=0,
            grid=(B,),
            # Blocks equal the full array dims -> exempt from the (8,128) rule.
            in_specs=[pl.BlockSpec((pl.Squeezed(), C, T),
                                   lambda b: (b, 0, 0))],
            out_specs=pl.BlockSpec((pl.Squeezed(), T, C),
                                   lambda b: (b, 0, 0)),
        ),
        compiler_params=pltpu.CompilerParams(
            dimension_semantics=("parallel",),
            vmem_limit_bytes=32 * 1024 * 1024,
        ),
    )(x)


# ---------------------------------------------------------------------------
# Public wrapper (matches TransposeLast.forward semantics)
# ---------------------------------------------------------------------------

def transpose_last(x, deconstruct_idx=None):
    """Pallas equivalent of TransposeLast.forward: x[idx].transpose(-2, -1)."""
    if deconstruct_idx is not None:
        # glue: tuple/list deconstruction happens outside the kernel
        x = x[deconstruct_idx]

    if x.ndim < 2:
        raise ValueError("transpose_last requires an array with >= 2 dims")

    *lead, C, T = x.shape
    B = math.prod(lead) if lead else 1
    x3 = x.reshape(B, C, T)

    itemsize = jnp.dtype(x.dtype).itemsize
    target_c, target_t = _tile_targets(itemsize)

    if C % 128 == 0 and T % 128 == 0:
        # Lane-aligned: tiled path directly.
        out3 = _transpose_last_3d_tiled(
            x3, _largest_tile(C, target_c), _largest_tile(T, target_t))
    elif C * T * itemsize <= _SMALL_SLAB_BYTES:
        # Small misaligned slab: whole-slab kernel (correct, bounded VMEM).
        out3 = _transpose_last_3d_full(x3)
    else:
        # Large misaligned slab: pad to 128-multiples, tiled transpose, slice.
        # TODO(synk): replace pad+slice with a pl.cdiv grid + masked edge
        # blocks to drop the two extra HBM passes.
        Cp, tc = _plan_padded_dim(C, target_c)
        Tp, tt = _plan_padded_dim(T, target_t)
        xp = jnp.pad(x3, ((0, 0), (0, Cp - C), (0, Tp - T)))
        out3 = _transpose_last_3d_tiled(xp, tc, tt)[:, :T, :C]

    return out3.reshape(*lead, T, C)


if __name__ == "__main__":
    root = jax.random.PRNGKey(0)
    k_big, k_small, k_mis, k_bf16 = jax.random.split(root, 4)

    # 1) Tiled path, lane-aligned f32: tc=256, tt=1024, grid (2, 1, 1).
    B, C, T = 2, 256, 1024
    x = jax.random.normal(k_big, (B, C, T), dtype=jnp.float32)
    out = jax.block_until_ready(transpose_last(x))
    assert out.shape == (B, T, C) and out.dtype == x.dtype
    assert jnp.array_equal(out, jnp.swapaxes(x, -2, -1)), "tiled path mismatch"

    # 2) Small lane-sparse slab + deconstruct_idx glue -> whole-slab fallback.
    Bs, Cs, Ts = 2, 4, 16
    xs = jax.random.normal(k_small, (Bs, Cs, Ts), dtype=jnp.float32)
    out_s = jax.block_until_ready(
        transpose_last((xs, jnp.zeros_like(xs)), deconstruct_idx=0))
    assert out_s.shape == (Bs, Ts, Cs) and out_s.dtype == xs.dtype
    assert jnp.array_equal(out_s, jnp.swapaxes(xs, -2, -1)), "fallback mismatch"

    # 3) Large-ish misaligned slab -> pad-to-128 + tiled + slice path.
    Bm, Cm, Tm = 1, 300, 2000
    xm = jax.random.normal(k_mis, (Bm, Cm, Tm), dtype=jnp.float32)
    out_m = jax.block_until_ready(transpose_last(xm))
    assert out_m.shape == (Bm, Tm, Cm) and out_m.dtype == xm.dtype
    assert jnp.array_equal(out_m, jnp.swapaxes(xm, -2, -1)), "padded path mismatch"

    # 4) bf16 aligned: exercises dtype-aware tile targets on the tiled path.
    Bh, Ch, Th = 2, 128, 256
    xh = jax.random.normal(k_bf16, (Bh, Ch, Th), dtype=jnp.bfloat16)
    out_h = jax.block_until_ready(transpose_last(xh))
    assert out_h.shape == (Bh, Th, Ch) and out_h.dtype == xh.dtype
    assert jnp.array_equal(out_h, jnp.swapaxes(xh, -2, -1)), "bf16 path mismatch"

    print("KERNEL_OK")
</pallas_src>

<mosaic_0001>
module attributes {stable_mosaic.version = 11 : i64} {
  func.func @_transpose_tile_kernel(%arg0: i32, %arg1: i32, %arg2: i32, %arg3: memref<1x256x1024xf32, #tpu.memory_space<vmem>>, %arg4: memref<1x1024x256xf32, #tpu.memory_space<vmem>>) attributes {dimension_semantics = [#tpu.dimension_semantics<parallel>, #tpu.dimension_semantics<parallel>, #tpu.dimension_semantics<parallel>], iteration_bounds = array<i64: 2, 1, 1>, scalar_prefetch = 0 : i64, scratch_operands = 0 : i64, tpu.core_type = #tpu.core_type<tc>, window_params = [{transform_indices = @transform_0, window_bounds = array<i64: 1, 256, 1024>}, {transform_indices = @transform_1, window_bounds = array<i64: 1, 1024, 256>}]} {
    %c0 = arith.constant 0 : index
    %c0_0 = arith.constant 0 : index
    %c0_1 = arith.constant 0 : index
    %0 = vector.load %arg3[%c0, %c0_0, %c0_1] : memref<1x256x1024xf32, #tpu.memory_space<vmem>>, vector<1x256x1024xf32>
    %1 = vector.shape_cast %0 : vector<1x256x1024xf32> to vector<256x1024xf32>
    %2 = tpu.transpose %1, [1, 0] : vector<256x1024xf32> -> vector<1024x256xf32>
    %c0_2 = arith.constant 0 : index
    %c0_3 = arith.constant 0 : index
    %c0_4 = arith.constant 0 : index
    %3 = vector.load %arg4[%c0_2, %c0_3, %c0_4] : memref<1x1024x256xf32, #tpu.memory_space<vmem>>, vector<1x1024x256xf32>
    %4 = vector.shape_cast %3 : vector<1x1024x256xf32> to vector<1024x256xf32>
    %5 = vector.shape_cast %2 : vector<1024x256xf32> to vector<1x1024x256xf32>
    tpu.vector_store %arg4[%c0_2, %c0_3, %c0_4], %5 {strides = array<i32>} : memref<1x1024x256xf32, #tpu.memory_space<vmem>>, vector<1x1024x256xf32>,
    return
  }
  func.func @transform_0(%arg0: i32, %arg1: i32, %arg2: i32) -> (i32, i32, i32) {
    %c0_i32 = arith.constant 0 : i32
    return %arg0, %arg2, %arg1 : i32, i32, i32
  }
  func.func @transform_1(%arg0: i32, %arg1: i32, %arg2: i32) -> (i32, i32, i32) {
    %c0_i32 = arith.constant 0 : i32
    return %arg0, %arg1, %arg2 : i32, i32, i32
  }
}

</mosaic_0001>

<bundles_post_ra>
// kernel: tpu_custom_call.1
= control target key start
LH: loop header
LB: loop body
LE: loop exit
PB: predicated region body
PF: predicated region fallthrough
CT: control target
= control target key end

     0   :  { %6 = vsyncpa [#allocation3], 0  ;;  %s2217_s0 = inlined_call_operand.hbm [shape: f32[2,256,1024], index: 0, kind: input, shape index: {}]   ;;  %s2218_s1 = inlined_call_operand.hbm [shape: f32[2,1024,256], index: 1, kind: output, shape index: {}]  }
   0x1   :  { %8 = vsyncpa [#allocation3 + $0x1], 0 }
   0x2   :  { %9 = vsyncpa [#allocation4], 0 }
   0x3   :  { %11 = vsyncpa [#allocation4 + $0x1], 0  ;;  %s1521_s6 = smov 0   ;;  %s1523_s7 = smov 0  }
   0x4   :  { %s1525_s8 = smov 0   ;;  %s1527_s9 = smov 0  }
   0x5   :  { %s1529_s10 = smov 0   ;;  %s1531_s11 = smov 0  }
   0x6 LB: > { %s1308_s12 = sadd.s32 4294967295, %s1503_s11   ;;  %s1309_s13 = sadd.s32 4294967294, %s1503_s11   ;;  %s1503_s11 = sphi %s1531_s11, %s17_s11   ;;  %s1499_s10 = sphi %s1529_s10, %s2233_s10   ;;  %s1495_s9 = sphi %s1527_s9, %s2232_s9   ;;  %s1491_s8 = sphi %s1525_s8, %s2231_s8   ;;  %s1487_s7 = sphi %s1523_s7, %s2230_s7   ;;  %s1483_s6 = sphi %s1521_s6, %s2229_s6  }
   0x7   : > { %s36_s14 = sadd.s32 1, %s1499_s10  ;;  %s47_s15 = sadd.s32 1, %s1491_s8 }
   0x8   : > { %p38_p0 = scmp.ge.s32.totalorder %s36_s14, 2  ;;  %p54_p1 = scmp.ne.s32.totalorder %s1491_s8, %s1487_s7 }
   0x9   : > { %p55_p2 = scmp.eq.s32.totalorder %s1503_s11, 0  ;;  %p60_p3 = scmp.ne.s32.totalorder %s1487_s7, %s1483_s6 }
   0xa   : > { %s2235_s14 = smov (%p38_p0, %s36_s14), 0  ;;  %p61_p5 = scmp.eq.s32.totalorder %s1308_s12, 0 }
   0xb   : > { %p1562_p4 = por %p55_p2, %p54_p1  ;;  %s40_s17 = ssub.s32 %s1499_s10, %s2235_s14 }
   0xc   : > { %p88_p6 = scmp.eq.s32.totalorder %s1308_s12, 1  ;;  %p45_p7 = scmp.eq.s32.totalorder %s40_s17, 0 }
   0xd   : > { %p1568_p8 = por %p61_p5, %p60_p3  ;;  %p94_p10 = scmp.eq.s32.totalorder %s1309_s13, 1 }
   0xe   : > { %p1572_p9 = por %p88_p6, %p54_p1  ;;  %p1337_p13 = scmp.lt.s32.totalorder %s1503_s11, 2 }
   0xf   : > { %s1577_s20 = scalar_select %p45_p7, %s1491_s8, %s47_s15  }
  0x10   : > { %s2222_s19 = scalar_select %p1572_p9, 1, 0 }
  0x11   : > { %p1579_p11 = por %p94_p10, %p60_p3  ;;  %s114_s22 = sand.u32 1, %s1491_s8  }
  0x12   : > { %s1312_s23 = sshll.u32 %s114_s22, 11  ;;  %s1323_s24 = sshll.u32 %s1499_s10, 15 }
  0x13   : > { %s2223_s21 = scalar_select %p1579_p11, 1, 0 }
  0x14   : > { %s1590_s27 = scalar_lea.hbm %s2217_s0, %s1323_s24  ;;  %s118_s28 = scalar_lea.vmem [#allocation2], %s1312_s23 }
  0x15   : > { %s130_s29 = sshll.u32 %s118_s28, 4  ;;  %p1596_p0 = pnand %p1337_p13, %p1562_p4  ;;  %s1592_s29 = int_to_ptr.vmem [resolvable:$true] %s130_s29 }
  0x16   : > { %s1601_s2 = scalar_lea.sflag [#allocation3], %s114_s22  ;;  %s1391_s3 = scalar_lea.hbm %s1590_s27, 32768 }
  0x17   : > { %p1392_p2 = scmp.ne.s32.totalorder %s1590_s27, %s1391_s3  ;;  %p1393_p3 = pneg %p1596_p0 }
  0x18   : > { %s1396_s12 = scalar_lea.hbm %s2217_s0, 65536  ;;  %p1397_p4 = scmp.lt.u32.totalorder %s1590_s27, %s2217_s0 }
  0x19   : > { %p1394_p5 = pnand %p1393_p3, %p1392_p2  ;;  %p1398_p7 = scmp.lt.u32.totalorder %s1396_s12, %s1391_s3 }
  0x1a   : > { %p1400_p13 = scmp.lt.u32.totalorder %s1391_s3, %s1590_s27 }
  0x1b   : > { %p1395_p6 = pneg %p1394_p5  ;;  %p1399_p10 = por %p1398_p7, %p1397_p4 }
  0x1d   : > { %p1401_p12 = por %p1400_p13, %p1399_p10 }
  0x1f   : > { %p1402_p1 = pnand %p1401_p12, %p1395_p6 }
  0x21   : > { %1405 = shalt.err (!%p1402_p1)
}
  0x22   : > { %s1406_s16 = scalar_lea.vmem %s1592_s29, 32768  ;;  %s1505_s17 = smov [#allocation2]  }
  0x23   : > { %p1407_p2 = scmp.ne.s32.totalorder %s1592_s29, %s1406_s16  ;;  %s1411_s22 = sshll.u32 %s1505_s17, 4  ;;  %s1412_s22 = int_to_ptr.vmem [resolvable:$false] %s1411_s22 }
  0x24   : > { %s1413_s23 = scalar_lea.vmem %s1412_s22, 65536  ;;  %p1414_p9 = scmp.lt.s32.totalorder %s1592_s29, %s1412_s22 }
  0x25   : > { %p1409_p5 = pnand %p1407_p2, %p1393_p3  ;;  %p1415_p4 = scmp.lt.s32.totalorder %s1413_s23, %s1406_s16 }
  0x27   : > { %p1410_p11 = pneg %p1409_p5  ;;  %p1416_p7 = por %p1415_p4, %p1414_p9 }
  0x29   : > { %p1417_p10 = pnand %p1416_p7, %p1410_p11 }
  0x2b   : > { %1420 = shalt.err (!%p1417_p10)
}
  0x2c   : > { %s1506_s24 = smov 1024   ;;  %s1507_s25 = smov 64  }
  0x2d   : > { %1332 = dma.hbm_to_vmem [thread:$0]  (!%p1596_p0), %s1590_s27, 32768, %s1592_s29, %s1601_s2, %s1506_s24, %s1506_s24, %s1507_s25  }
  0x2e   : > { %p138_p12 = scmp.lt.s32.totalorder %s1503_s11, 3  ;;  %p2225_p1 = scmp.ge.s32.totalorder %s1503_s11, 1 }
  0x30   : > { %p139_p3 = pnand %p2225_p1, %p138_p12 }
  0x31   : > { %s1633_s26 = sand.u32 (!%p139_p3), 1, %s1487_s7  }
  0x32   : > { %142 = sbr.rel (%p139_p3) target bundleno = 711 (0x2c7), region = 24  ;;  %s1316_s28 = sshll.u32 (!%p139_p3), %s1633_s26, 11 }
  0x33   : > { %s145_s3 = scalar_lea.sflag (!%p139_p3), [#allocation3], %s1633_s26  ;;  %s1639_s4 = scalar_lea.vmem (!%p139_p3), [#allocation2], %s1316_s28 }
  0x39   : > { %1474 = dma.done.wait (%p1568_p8), %s145_s3, 32768  }
  0x3a   : > { %1476 = vsyncadd (%p1568_p8), %s145_s3, 4294934528  ;;  %v172_v0 = vld [vmem:[%s1639_s4 + $0x8] sm:$0xff]  ;;  %v171_v1 = vld [vmem:[%s1639_s4] sm:$0xff]  ;;  %s1713_s18 = scalar_lea.vmem [#allocation5], %s1316_s28  ;;  %s1324_s27 = sshll.u32 %s1495_s9, 15 }
  0x3b   : > { %459 = vxpose.xlu1.b32.start [1/16] %v172_v0, 128  ;;  %427 = vxpose.xlu0.b32.start [1/16] %v171_v1, 128  ;;  %v180_v2 = vld [vmem:[%s1639_s4 + $0x48] sm:$0xff]  ;;  %v179_v3 = vld [vmem:[%s1639_s4 + $0x40] sm:$0xff]  ;;  %v174_v32 = vld [vmem:[%s1639_s4 + $0x18] sm:$0xff]  ;;  %s1214_s29 = sshll.u32 %s1713_s18, 4  ;;  %s2164_s5 = scalar_lea.hbm %s2218_s1, %s1324_s27  ;;  %s2166_s29 = int_to_ptr.vmem [resolvable:$true] %s1214_s29 }
  0x3c   : > { %v188_v4 = vld [vmem:[%s1639_s4 + $0x88] sm:$0xff]  ;;  %v187_v5 = vld [vmem:[%s1639_s4 + $0x80] sm:$0xff]  ;;  %v173_v33 = vld [vmem:[%s1639_s4 + $0x10] sm:$0xff]  ;;  %s1196_s9 = scalar_lea.sflag [#allocation4], %s1633_s26  ;;  %s1421_s12 = scalar_lea.vmem %s2166_s29, 32768 }
  0x3d   : > { %v196_v6 = vld [vmem:[%s1639_s4 + $0xc8] sm:$0xff]  ;;  %v195_v7 = vld [vmem:[%s1639_s4 + $0xc0] sm:$0xff]  ;;  %v182_v34 = vld [vmem:[%s1639_s4 + $0x58] sm:$0xff]  ;;  %p1422_p8 = scmp.ne.s32.totalorder %s2166_s29, %s1421_s12  ;;  %p2226_p9 = scmp.ne.s32.totalorder %s2222_s19, 0 }
  0x3e   : > { %v204_v8 = vld [vmem:[%s1639_s4 + $0x108] sm:$0xff]  ;;  %v203_v9 = vld [vmem:[%s1639_s4 + $0x100] sm:$0xff]  ;;  %v181_v35 = vld [vmem:[%s1639_s4 + $0x50] sm:$0xff]  ;;  %s1508_s13 = smov [#allocation5]  }
  0x3f   : > { %460 = vxpose.xlu1.b32.cont [2/16] %v180_v2, 128  ;;  %428 = vxpose.xlu0.b32.cont [2/16] %v179_v3, 128  ;;  %v212_v10 = vld [vmem:[%s1639_s4 + $0x148] sm:$0xff]  ;;  %v211_v11 = vld [vmem:[%s1639_s4 + $0x140] sm:$0xff]  ;;  %v190_v36 = vld [vmem:[%s1639_s4 + $0x98] sm:$0xff]  ;;  %p1423_p11 = pnand %p1422_p8, %p2226_p9  ;;  %s1425_s15 = sshll.u32 %s1508_s13, 4  ;;  %s1426_s15 = int_to_ptr.vmem [resolvable:$false] %s1425_s15 }
  0x40   : > { %v220_v12 = vld [vmem:[%s1639_s4 + $0x188] sm:$0xff]  ;;  %v219_v13 = vld [vmem:[%s1639_s4 + $0x180] sm:$0xff]  ;;  %v189_v37 = vld [vmem:[%s1639_s4 + $0x90] sm:$0xff]  ;;  %s1427_s16 = scalar_lea.vmem %s1426_s15, 65536  ;;  %p1428_p6 = scmp.lt.s32.totalorder %s2166_s29, %s1426_s15 }
  0x41   : > { %v228_v14 = vld [vmem:[%s1639_s4 + $0x1c8] sm:$0xff]  ;;  %v227_v15 = vld [vmem:[%s1639_s4 + $0x1c0] sm:$0xff]  ;;  %v198_v38 = vld [vmem:[%s1639_s4 + $0xd8] sm:$0xff]  ;;  %p1424_p0 = pneg %p1423_p11  ;;  %p1429_p13 = scmp.lt.s32.totalorder %s1427_s16, %s1421_s12 }
  0x42   : > { %v236_v16 = vld [vmem:[%s1639_s4 + $0x208] sm:$0xff]  ;;  %v235_v17 = vld [vmem:[%s1639_s4 + $0x200] sm:$0xff]  ;;  %v197_v39 = vld [vmem:[%s1639_s4 + $0xd0] sm:$0xff] }
  0x43   : > { %461 = vxpose.xlu1.b32.cont [3/16] %v188_v4, 128  ;;  %429 = vxpose.xlu0.b32.cont [3/16] %v187_v5, 128  ;;  %v244_v18 = vld [vmem:[%s1639_s4 + $0x248] sm:$0xff]  ;;  %v243_v19 = vld [vmem:[%s1639_s4 + $0x240] sm:$0xff]  ;;  %v206_v40 = vld [vmem:[%s1639_s4 + $0x118] sm:$0xff]  ;;  %p1430_p2 = por %p1429_p13, %p1428_p6 }
  0x44   : > { %v252_v20 = vld [vmem:[%s1639_s4 + $0x288] sm:$0xff]  ;;  %v251_v21 = vld [vmem:[%s1639_s4 + $0x280] sm:$0xff]  ;;  %v205_v41 = vld [vmem:[%s1639_s4 + $0x110] sm:$0xff] }
  0x45   : > { %v260_v22 = vld [vmem:[%s1639_s4 + $0x2c8] sm:$0xff]  ;;  %v259_v23 = vld [vmem:[%s1639_s4 + $0x2c0] sm:$0xff]  ;;  %v214_v42 = vld [vmem:[%s1639_s4 + $0x158] sm:$0xff]  ;;  %p1431_p5 = pnand %p1430_p2, %p1424_p0 }
  0x46   : > { %v268_v24 = vld [vmem:[%s1639_s4 + $0x308] sm:$0xff]  ;;  %v267_v25 = vld [vmem:[%s1639_s4 + $0x300] sm:$0xff]  ;;  %v213_v43 = vld [vmem:[%s1639_s4 + $0x150] sm:$0xff] }
  0x47   : > { %462 = vxpose.xlu1.b32.cont [4/16] %v196_v6, 128  ;;  %430 = vxpose.xlu0.b32.cont [4/16] %v195_v7, 128  ;;  %v276_v26 = vld [vmem:[%s1639_s4 + $0x348] sm:$0xff]  ;;  %v275_v27 = vld [vmem:[%s1639_s4 + $0x340] sm:$0xff]  ;;  %v222_v44 = vld [vmem:[%s1639_s4 + $0x198] sm:$0xff] }
  0x48   : > { %v284_v28 = vld [vmem:[%s1639_s4 + $0x388] sm:$0xff]  ;;  %v283_v29 = vld [vmem:[%s1639_s4 + $0x380] sm:$0xff]  ;;  %v221_v45 = vld [vmem:[%s1639_s4 + $0x190] sm:$0xff] }
  0x49   : > { %v292_v30 = vld [vmem:[%s1639_s4 + $0x3c8] sm:$0xff]  ;;  %v291_v31 = vld [vmem:[%s1639_s4 + $0x3c0] sm:$0xff]  ;;  %v230_v46 = vld [vmem:[%s1639_s4 + $0x1d8] sm:$0xff] }
  0x4a   : > { %v229_v47 = vld [vmem:[%s1639_s4 + $0x1d0] sm:$0xff]  ;;  %v238_v48 = vld [vmem:[%s1639_s4 + $0x218] sm:$0xff]  ;;  %v176_v0 = vld [vmem:[%s1639_s4 + $0x28] sm:$0xff] }
  0x4b   : > { %463 = vxpose.xlu1.b32.cont [5/16] %v204_v8, 128  ;;  %431 = vxpose.xlu0.b32.cont [5/16] %v203_v9, 128  ;;  %v237_v49 = vld [vmem:[%s1639_s4 + $0x210] sm:$0xff]  ;;  %v246_v50 = vld [vmem:[%s1639_s4 + $0x258] sm:$0xff]  ;;  %v175_v1 = vld [vmem:[%s1639_s4 + $0x20] sm:$0xff] }
  0x4c   : > { %v245_v51 = vld [vmem:[%s1639_s4 + $0x250] sm:$0xff]  ;;  %v254_v52 = vld [vmem:[%s1639_s4 + $0x298] sm:$0xff]  ;;  %v184_v4 = vld [vmem:[%s1639_s4 + $0x68] sm:$0xff] }
  0x4d   : > { %v253_v53 = vld [vmem:[%s1639_s4 + $0x290] sm:$0xff]  ;;  %v262_v54 = vld [vmem:[%s1639_s4 + $0x2d8] sm:$0xff]  ;;  %v183_v5 = vld [vmem:[%s1639_s4 + $0x60] sm:$0xff] }
  0x4e   : > { %v261_v55 = vld [vmem:[%s1639_s4 + $0x2d0] sm:$0xff]  ;;  %v270_v56 = vld [vmem:[%s1639_s4 + $0x318] sm:$0xff]  ;;  %v192_v8 = vld [vmem:[%s1639_s4 + $0xa8] sm:$0xff] }
  0x4f   : > { %464 = vxpose.xlu1.b32.cont [6/16] %v212_v10, 128  ;;  %432 = vxpose.xlu0.b32.cont [6/16] %v211_v11, 128  ;;  %v269_v57 = vld [vmem:[%s1639_s4 + $0x310] sm:$0xff]  ;;  %v278_v58 = vld [vmem:[%s1639_s4 + $0x358] sm:$0xff]  ;;  %v191_v9 = vld [vmem:[%s1639_s4 + $0xa0] sm:$0xff] }
  0x50   : > { %v277_v59 = vld [vmem:[%s1639_s4 + $0x350] sm:$0xff]  ;;  %v286_v60 = vld [vmem:[%s1639_s4 + $0x398] sm:$0xff] }
  0x51   : > { %v285_v61 = vld [vmem:[%s1639_s4 + $0x390] sm:$0xff]  ;;  %v294_v62 = vld [vmem:[%s1639_s4 + $0x3d8] sm:$0xff] }
  0x52   : > { %v293_v63 = vld [vmem:[%s1639_s4 + $0x3d0] sm:$0xff] }
  0x53   : > { %465 = vxpose.xlu1.b32.cont [7/16] %v220_v12, 128  ;;  %433 = vxpose.xlu0.b32.cont [7/16] %v219_v13, 128  ;;  %v200_v12 = vld [vmem:[%s1639_s4 + $0xe8] sm:$0xff]  ;;  %v199_v13 = vld [vmem:[%s1639_s4 + $0xe0] sm:$0xff] }
  0x57   : > { %466 = vxpose.xlu1.b32.cont [8/16] %v228_v14, 128  ;;  %434 = vxpose.xlu0.b32.cont [8/16] %v227_v15, 128 }
  0x5b   : > { %467 = vxpose.xlu1.b32.cont [9/16] %v236_v16, 128  ;;  %435 = vxpose.xlu0.b32.cont [9/16] %v235_v17, 128  ;;  %v208_v16 = vld [vmem:[%s1639_s4 + $0x128] sm:$0xff]  ;;  %v207_v17 = vld [vmem:[%s1639_s4 + $0x120] sm:$0xff] }
  0x5f   : > { %468 = vxpose.xlu1.b32.cont [10/16] %v244_v18, 128  ;;  %436 = vxpose.xlu0.b32.cont [10/16] %v243_v19, 128 }
  0x63   : > { %469 = vxpose.xlu1.b32.cont [11/16] %v252_v20, 128  ;;  %437 = vxpose.xlu0.b32.cont [11/16] %v251_v21, 128  ;;  %v216_v20 = vld [vmem:[%s1639_s4 + $0x168] sm:$0xff]  ;;  %v215_v21 = vld [vmem:[%s1639_s4 + $0x160] sm:$0xff] }
  0x67   : > { %470 = vxpose.xlu1.b32.cont [12/16] %v260_v22, 128  ;;  %438 = vxpose.xlu0.b32.cont [12/16] %v259_v23, 128 }
  0x6b   : > { %471 = vxpose.xlu1.b32.cont [13/16] %v268_v24, 128  ;;  %439 = vxpose.xlu0.b32.cont [13/16] %v267_v25, 128  ;;  %v224_v24 = vld [vmem:[%s1639_s4 + $0x1a8] sm:$0xff]  ;;  %v223_v25 = vld [vmem:[%s1639_s4 + $0x1a0] sm:$0xff] }
  0x6f   : > { %472 = vxpose.xlu1.b32.cont [14/16] %v276_v26, 128  ;;  %440 = vxpose.xlu0.b32.cont [14/16] %v275_v27, 128 }
  0x73   : > { %473 = vxpose.xlu1.b32.cont [15/16] %v284_v28, 128  ;;  %441 = vxpose.xlu0.b32.cont [15/16] %v283_v29, 128  ;;  %v232_v28 = vld [vmem:[%s1639_s4 + $0x1e8] sm:$0xff]  ;;  %v231_v29 = vld [vmem:[%s1639_s4 + $0x1e0] sm:$0xff] }
  0x77   : > { %474 = vxpose.xlu1.b32.end [16/16] %v292_v30, 128  ;;  %442 = vxpose.xlu0.b32.end [16/16] %v291_v31, 128 }
  0x7b   : > { %523 = vxpose.xlu1.b32.start [1/16] %v174_v32, 128  ;;  %491 = vxpose.xlu0.b32.start [1/16] %v173_v33, 128  ;;  %v240_v32 = vld [vmem:[%s1639_s4 + $0x228] sm:$0xff]  ;;  %v239_v33 = vld [vmem:[%s1639_s4 + $0x220] sm:$0xff] }
  0x7f   : > { %524 = vxpose.xlu1.b32.cont [2/16] %v182_v34, 128  ;;  %492 = vxpose.xlu0.b32.cont [2/16] %v181_v35, 128 }
  0x83   : > { %525 = vxpose.xlu1.b32.cont [3/16] %v190_v36, 128  ;;  %493 = vxpose.xlu0.b32.cont [3/16] %v189_v37, 128  ;;  %v248_v36 = vld [vmem:[%s1639_s4 + $0x268] sm:$0xff]  ;;  %v247_v37 = vld [vmem:[%s1639_s4 + $0x260] sm:$0xff] }
  0x87   : > { %526 = vxpose.xlu1.b32.cont [4/16] %v198_v38, 128  ;;  %494 = vxpose.xlu0.b32.cont [4/16] %v197_v39, 128 }
  0x8b   : > { %527 = vxpose.xlu1.b32.cont [5/16] %v206_v40, 128  ;;  %495 = vxpose.xlu0.b32.cont [5/16] %v205_v41, 128  ;;  %v256_v40 = vld [vmem:[%s1639_s4 + $0x2a8] sm:$0xff]  ;;  %v255_v41 = vld [vmem:[%s1639_s4 + $0x2a0] sm:$0xff] }
  0x8f   : > { %528 = vxpose.xlu1.b32.cont [6/16] %v214_v42, 128  ;;  %496 = vxpose.xlu0.b32.cont [6/16] %v213_v43, 128 }
  0x93   : > { %529 = vxpose.xlu1.b32.cont [7/16] %v222_v44, 128  ;;  %497 = vxpose.xlu0.b32.cont [7/16] %v221_v45, 128  ;;  %v264_v44 = vld [vmem:[%s1639_s4 + $0x2e8] sm:$0xff]  ;;  %v263_v45 = vld [vmem:[%s1639_s4 + $0x2e0] sm:$0xff] }
  0x97   : > { %530 = vxpose.xlu1.b32.cont [8/16] %v230_v46, 128  ;;  %498 = vxpose.xlu0.b32.cont [8/16] %v229_v47, 128 }
  0x9b   : > { %531 = vxpose.xlu1.b32.cont [9/16] %v238_v48, 128  ;;  %499 = vxpose.xlu0.b32.cont [9/16] %v237_v49, 128  ;;  %v272_v48 = vld [vmem:[%s1639_s4 + $0x328] sm:$0xff]  ;;  %v271_v49 = vld [vmem:[%s1639_s4 + $0x320] sm:$0xff] }
  0x9f   : > { %532 = vxpose.xlu1.b32.cont [10/16] %v246_v50, 128  ;;  %500 = vxpose.xlu0.b32.cont [10/16] %v245_v51, 128 }
  0xa3   : > { %533 = vxpose.xlu1.b32.cont [11/16] %v254_v52, 128  ;;  %501 = vxpose.xlu0.b32.cont [11/16] %v253_v53, 128  ;;  %v280_v52 = vld [vmem:[%s1639_s4 + $0x368] sm:$0xff]  ;;  %v279_v53 = vld [vmem:[%s1639_s4 + $0x360] sm:$0xff] }
  0xa7   : > { %534 = vxpose.xlu1.b32.cont [12/16] %v262_v54, 128  ;;  %502 = vxpose.xlu0.b32.cont [12/16] %v261_v55, 128 }
  0xab   : > { %535 = vxpose.xlu1.b32.cont [13/16] %v270_v56, 128  ;;  %503 = vxpose.xlu0.b32.cont [13/16] %v269_v57, 128  ;;  %v288_v56 = vld [vmem:[%s1639_s4 + $0x3a8] sm:$0xff]  ;;  %v287_v57 = vld [vmem:[%s1639_s4 + $0x3a0] sm:$0xff] }
  0xaf   : > { %536 = vxpose.xlu1.b32.cont [14/16] %v278_v58, 128  ;;  %504 = vxpose.xlu0.b32.cont [14/16] %v277_v59, 128 }
  0xb3   : > { %537 = vxpose.xlu1.b32.cont [15/16] %v286_v60, 128  ;;  %505 = vxpose.xlu0.b32.cont [15/16] %v285_v61, 128  ;;  %v296_v60 = vld [vmem:[%s1639_s4 + $0x3e8] sm:$0xff]  ;;  %v295_v61 = vld [vmem:[%s1639_s4 + $0x3e0] sm:$0xff] }
  0xb7   : > { %538 = vxpose.xlu1.b32.end [16/16] %v294_v62, 128  ;;  %506 = vxpose.xlu0.b32.end [16/16] %v293_v63, 128 }
  0xbb   : > { %587 = vxpose.xlu1.b32.start [1/16] %v176_v0, 128  ;;  %v475_v2 = vpop.trf.xlu1  ;;  %555 = vxpose.xlu0.b32.start [1/16] %v175_v1, 128  ;;  %v443_v3 = vpop.trf.xlu0  ;;  %v178_v0 = vld [vmem:[%s1639_s4 + $0x38] sm:$0xff]  ;;  %v177_v1 = vld [vmem:[%s1639_s4 + $0x30] sm:$0xff] }
  0xbc   : > { %971 = vst [vmem:[%s1713_s18 + $0x100] sm:$0xff] %v475_v2  ;;  %939 = vst [vmem:[%s1713_s18] sm:$0xff] %v443_v3 }
  0xbf   : > { %588 = vxpose.xlu1.b32.cont [2/16] %v184_v4, 128  ;;  %v476_v6 = vpop.trf.xlu1  ;;  %556 = vxpose.xlu0.b32.cont [2/16] %v183_v5, 128  ;;  %v444_v7 = vpop.trf.xlu0  ;;  %v186_v4 = vld [vmem:[%s1639_s4 + $0x78] sm:$0xff]  ;;  %v185_v5 = vld [vmem:[%s1639_s4 + $0x70] sm:$0xff] }
  0xc0   : > { %973 = vst [vmem:[%s1713_s18 + $0x110] sm:$0xff] %v476_v6  ;;  %941 = vst [vmem:[%s1713_s18 + $0x10] sm:$0xff] %v444_v7 }
  0xc3   : > { %589 = vxpose.xlu1.b32.cont [3/16] %v192_v8, 128  ;;  %v477_v10 = vpop.trf.xlu1  ;;  %557 = vxpose.xlu0.b32.cont [3/16] %v191_v9, 128  ;;  %v445_v11 = vpop.trf.xlu0  ;;  %v194_v8 = vld [vmem:[%s1639_s4 + $0xb8] sm:$0xff]  ;;  %v193_v9 = vld [vmem:[%s1639_s4 + $0xb0] sm:$0xff] }
  0xc4   : > { %975 = vst [vmem:[%s1713_s18 + $0x120] sm:$0xff] %v477_v10  ;;  %943 = vst [vmem:[%s1713_s18 + $0x20] sm:$0xff] %v445_v11 }
  0xc7   : > { %590 = vxpose.xlu1.b32.cont [4/16] %v200_v12, 128  ;;  %v478_v14 = vpop.trf.xlu1  ;;  %558 = vxpose.xlu0.b32.cont [4/16] %v199_v13, 128  ;;  %v446_v15 = vpop.trf.xlu0  ;;  %v202_v12 = vld [vmem:[%s1639_s4 + $0xf8] sm:$0xff]  ;;  %v201_v13 = vld [vmem:[%s1639_s4 + $0xf0] sm:$0xff] }
  0xc8   : > { %977 = vst [vmem:[%s1713_s18 + $0x130] sm:$0xff] %v478_v14  ;;  %945 = vst [vmem:[%s1713_s18 + $0x30] sm:$0xff] %v446_v15 }
  0xcb   : > { %591 = vxpose.xlu1.b32.cont [5/16] %v208_v16, 128  ;;  %v479_v18 = vpop.trf.xlu1  ;;  %559 = vxpose.xlu0.b32.cont [5/16] %v207_v17, 128  ;;  %v447_v19 = vpop.trf.xlu0  ;;  %v210_v16 = vld [vmem:[%s1639_s4 + $0x138] sm:$0xff]  ;;  %v209_v17 = vld [vmem:[%s1639_s4 + $0x130] sm:$0xff] }
  0xcc   : > { %979 = vst [vmem:[%s1713_s18 + $0x140] sm:$0xff] %v479_v18  ;;  %947 = vst [vmem:[%s1713_s18 + $0x40] sm:$0xff] %v447_v19 }
  0xcf   : > { %592 = vxpose.xlu1.b32.cont [6/16] %v216_v20, 128  ;;  %v480_v22 = vpop.trf.xlu1  ;;  %560 = vxpose.xlu0.b32.cont [6/16] %v215_v21, 128  ;;  %v448_v23 = vpop.trf.xlu0  ;;  %v218_v20 = vld [vmem:[%s1639_s4 + $0x178] sm:$0xff]  ;;  %v217_v21 = vld [vmem:[%s1639_s4 + $0x170] sm:$0xff] }
  0xd0   : > { %981 = vst [vmem:[%s1713_s18 + $0x150] sm:$0xff] %v480_v22  ;;  %949 = vst [vmem:[%s1713_s18 + $0x50] sm:$0xff] %v448_v23 }
  0xd3   : > { %593 = vxpose.xlu1.b32.cont [7/16] %v224_v24, 128  ;;  %v481_v26 = vpop.trf.xlu1  ;;  %561 = vxpose.xlu0.b32.cont [7/16] %v223_v25, 128  ;;  %v449_v27 = vpop.trf.xlu0  ;;  %v226_v24 = vld [vmem:[%s1639_s4 + $0x1b8] sm:$0xff]  ;;  %v225_v25 = vld [vmem:[%s1639_s4 + $0x1b0] sm:$0xff] }
  0xd4   : > { %983 = vst [vmem:[%s1713_s18 + $0x160] sm:$0xff] %v481_v26  ;;  %951 = vst [vmem:[%s1713_s18 + $0x60] sm:$0xff] %v449_v27 }
  0xd7   : > { %594 = vxpose.xlu1.b32.cont [8/16] %v232_v28, 128  ;;  %v482_v30 = vpop.trf.xlu1  ;;  %562 = vxpose.xlu0.b32.cont [8/16] %v231_v29, 128  ;;  %v450_v31 = vpop.trf.xlu0  ;;  %v234_v28 = vld [vmem:[%s1639_s4 + $0x1f8] sm:$0xff]  ;;  %v233_v29 = vld [vmem:[%s1639_s4 + $0x1f0] sm:$0xff] }
  0xd8   : > { %985 = vst [vmem:[%s1713_s18 + $0x170] sm:$0xff] %v482_v30  ;;  %953 = vst [vmem:[%s1713_s18 + $0x70] sm:$0xff] %v450_v31 }
  0xdb   : > { %595 = vxpose.xlu1.b32.cont [9/16] %v240_v32, 128  ;;  %v483_v34 = vpop.trf.xlu1  ;;  %563 = vxpose.xlu0.b32.cont [9/16] %v239_v33, 128  ;;  %v451_v35 = vpop.trf.xlu0  ;;  %v242_v32 = vld [vmem:[%s1639_s4 + $0x238] sm:$0xff]  ;;  %v241_v33 = vld [vmem:[%s1639_s4 + $0x230] sm:$0xff] }
  0xdc   : > { %987 = vst [vmem:[%s1713_s18 + $0x180] sm:$0xff] %v483_v34  ;;  %955 = vst [vmem:[%s1713_s18 + $0x80] sm:$0xff] %v451_v35 }
  0xdf   : > { %596 = vxpose.xlu1.b32.cont [10/16] %v248_v36, 128  ;;  %v484_v38 = vpop.trf.xlu1  ;;  %564 = vxpose.xlu0.b32.cont [10/16] %v247_v37, 128  ;;  %v452_v39 = vpop.trf.xlu0  ;;  %v250_v36 = vld [vmem:[%s1639_s4 + $0x278] sm:$0xff]  ;;  %v249_v37 = vld [vmem:[%s1639_s4 + $0x270] sm:$0xff] }
  0xe0   : > { %989 = vst [vmem:[%s1713_s18 + $0x190] sm:$0xff] %v484_v38  ;;  %957 = vst [vmem:[%s1713_s18 + $0x90] sm:$0xff] %v452_v39 }
  0xe3   : > { %597 = vxpose.xlu1.b32.cont [11/16] %v256_v40, 128  ;;  %v485_v42 = vpop.trf.xlu1  ;;  %565 = vxpose.xlu0.b32.cont [11/16] %v255_v41, 128  ;;  %v453_v43 = vpop.trf.xlu0  ;;  %v258_v40 = vld [vmem:[%s1639_s4 + $0x2b8] sm:$0xff]  ;;  %v257_v41 = vld [vmem:[%s1639_s4 + $0x2b0] sm:$0xff] }
  0xe4   : > { %991 = vst [vmem:[%s1713_s18 + $0x1a0] sm:$0xff] %v485_v42  ;;  %959 = vst [vmem:[%s1713_s18 + $0xa0] sm:$0xff] %v453_v43 }
  0xe7   : > { %598 = vxpose.xlu1.b32.cont [12/16] %v264_v44, 128  ;;  %v486_v46 = vpop.trf.xlu1  ;;  %566 = vxpose.xlu0.b32.cont [12/16] %v263_v45, 128  ;;  %v454_v47 = vpop.trf.xlu0  ;;  %v266_v44 = vld [vmem:[%s1639_s4 + $0x2f8] sm:$0xff]  ;;  %v265_v45 = vld [vmem:[%s1639_s4 + $0x2f0] sm:$0xff] }
  0xe8   : > { %993 = vst [vmem:[%s1713_s18 + $0x1b0] sm:$0xff] %v486_v46  ;;  %961 = vst [vmem:[%s1713_s18 + $0xb0] sm:$0xff] %v454_v47 }
  0xeb   : > { %599 = vxpose.xlu1.b32.cont [13/16] %v272_v48, 128  ;;  %v487_v50 = vpop.trf.xlu1  ;;  %567 = vxpose.xlu0.b32.cont [13/16] %v271_v49, 128  ;;  %v455_v51 = vpop.trf.xlu0  ;;  %v274_v48 = vld [vmem:[%s1639_s4 + $0x338] sm:$0xff]  ;;  %v273_v49 = vld [vmem:[%s1639_s4 + $0x330] sm:$0xff] }
  0xec   : > { %995 = vst [vmem:[%s1713_s18 + $0x1c0] sm:$0xff] %v487_v50  ;;  %963 = vst [vmem:[%s1713_s18 + $0xc0] sm:$0xff] %v455_v51 }
  0xef   : > { %600 = vxpose.xlu1.b32.cont [14/16] %v280_v52, 128  ;;  %v488_v54 = vpop.trf.xlu1  ;;  %568 = vxpose.xlu0.b32.cont [14/16] %v279_v53, 128  ;;  %v456_v55 = vpop.trf.xlu0  ;;  %v282_v52 = vld [vmem:[%s1639_s4 + $0x378] sm:$0xff]  ;;  %v281_v53 = vld [vmem:[%s1639_s4 + $0x370] sm:$0xff] }
  0xf0   : > { %997 = vst [vmem:[%s1713_s18 + $0x1d0] sm:$0xff] %v488_v54  ;;  %965 = vst [vmem:[%s1713_s18 + $0xd0] sm:$0xff] %v456_v55 }
  0xf3   : > { %601 = vxpose.xlu1.b32.cont [15/16] %v288_v56, 128  ;;  %v489_v58 = vpop.trf.xlu1  ;;  %569 = vxpose.xlu0.b32.cont [15/16] %v287_v57, 128  ;;  %v457_v59 = vpop.trf.xlu0  ;;  %v290_v56 = vld [vmem:[%s1639_s4 + $0x3b8] sm:$0xff]  ;;  %v289_v57 = vld [vmem:[%s1639_s4 + $0x3b0] sm:$0xff] }
  0xf4   : > { %999 = vst [vmem:[%s1713_s18 + $0x1e0] sm:$0xff] %v489_v58  ;;  %967 = vst [vmem:[%s1713_s18 + $0xe0] sm:$0xff] %v457_v59 }
  0xf7   : > { %602 = vxpose.xlu1.b32.end [16/16] %v296_v60, 128  ;;  %v490_v62 = vpop.trf.xlu1  ;;  %570 = vxpose.xlu0.b32.end [16/16] %v295_v61, 128  ;;  %v458_v63 = vpop.trf.xlu0  ;;  %v298_v60 = vld [vmem:[%s1639_s4 + $0x3f8] sm:$0xff]  ;;  %v297_v61 = vld [vmem:[%s1639_s4 + $0x3f0] sm:$0xff] }
  0xf8   : > { %1001 = vst [vmem:[%s1713_s18 + $0x1f0] sm:$0xff] %v490_v62  ;;  %969 = vst [vmem:[%s1713_s18 + $0xf0] sm:$0xff] %v458_v63 }
  0xfb   : > { %651 = vxpose.xlu1.b32.start [1/16] %v178_v0, 128  ;;  %v539_v2 = vpop.trf.xlu1  ;;  %619 = vxpose.xlu0.b32.start [1/16] %v177_v1, 128  ;;  %v507_v3 = vpop.trf.xlu0  ;;  %v300_v0 = vld [vmem:[%s1639_s4 + $0x408] sm:$0xff]  ;;  %v299_v1 = vld [vmem:[%s1639_s4 + $0x400] sm:$0xff] }
  0xfc   : > { %1035 = vst [vmem:[%s1713_s18 + $0x300] sm:$0xff] %v539_v2  ;;  %1003 = vst [vmem:[%s1713_s18 + $0x200] sm:$0xff] %v507_v3 }
  0xff   : > { %652 = vxpose.xlu1.b32.cont [2/16] %v186_v4, 128  ;;  %v540_v6 = vpop.trf.xlu1  ;;  %620 = vxpose.xlu0.b32.cont [2/16] %v185_v5, 128  ;;  %v508_v7 = vpop.trf.xlu0  ;;  %v308_v4 = vld [vmem:[%s1639_s4 + $0x448] sm:$0xff]  ;;  %v307_v5 = vld [vmem:[%s1639_s4 + $0x440] sm:$0xff] }
 0x100   : > { %1037 = vst [vmem:[%s1713_s18 + $0x310] sm:$0xff] %v540_v6  ;;  %1005 = vst [vmem:[%s1713_s18 + $0x210] sm:$0xff] %v508_v7 }
 0x103   : > { %653 = vxpose.xlu1.b32.cont [3/16] %v194_v8, 128  ;;  %v541_v10 = vpop.trf.xlu1  ;;  %621 = vxpose.xlu0.b32.cont [3/16] %v193_v9, 128  ;;  %v509_v11 = vpop.trf.xlu0  ;;  %v316_v8 = vld [vmem:[%s1639_s4 + $0x488] sm:$0xff]  ;;  %v315_v9 = vld [vmem:[%s1639_s4 + $0x480] sm:$0xff] }
 0x104   : > { %1039 = vst [vmem:[%s1713_s18 + $0x320] sm:$0xff] %v541_v10  ;;  %1007 = vst [vmem:[%s1713_s18 + $0x220] sm:$0xff] %v509_v11 }
 0x107   : > { %654 = vxpose.xlu1.b32.cont [4/16] %v202_v12, 128  ;;  %v542_v14 = vpop.trf.xlu1  ;;  %622 = vxpose.xlu0.b32.cont [4/16] %v201_v13, 128  ;;  %v510_v15 = vpop.trf.xlu0  ;;  %v324_v12 = vld [vmem:[%s1639_s4 + $0x4c8] sm:$0xff]  ;;  %v323_v13 = vld [vmem:[%s1639_s4 + $0x4c0] sm:$0xff] }
 0x108   : > { %1041 = vst [vmem:[%s1713_s18 + $0x330] sm:$0xff] %v542_v14  ;;  %1009 = vst [vmem:[%s1713_s18 + $0x230] sm:$0xff] %v510_v15 }
 0x10b   : > { %655 = vxpose.xlu1.b32.cont [5/16] %v210_v16, 128  ;;  %v543_v18 = vpop.trf.xlu1  ;;  %623 = vxpose.xlu0.b32.cont [5/16] %v209_v17, 128  ;;  %v511_v19 = vpop.trf.xlu0  ;;  %v332_v16 = vld [vmem:[%s1639_s4 + $0x508] sm:$0xff]  ;;  %v331_v17 = vld [vmem:[%s1639_s4 + $0x500] sm:$0xff] }
 0x10c   : > { %1043 = vst [vmem:[%s1713_s18 + $0x340] sm:$0xff] %v543_v18  ;;  %1011 = vst [vmem:[%s1713_s18 + $0x240] sm:$0xff] %v511_v19 }
 0x10f   : > { %656 = vxpose.xlu1.b32.cont [6/16] %v218_v20, 128  ;;  %v544_v22 = vpop.trf.xlu1  ;;  %624 = vxpose.xlu0.b32.cont [6/16] %v217_v21, 128  ;;  %v512_v23 = vpop.trf.xlu0  ;;  %v340_v20 = vld [vmem:[%s1639_s4 + $0x548] sm:$0xff]  ;;  %v339_v21 = vld [vmem:[%s1639_s4 + $0x540] sm:$0xff] }
 0x110   : > { %1045 = vst [vmem:[%s1713_s18 + $0x350] sm:$0xff] %v544_v22  ;;  %1013 = vst [vmem:[%s1713_s18 + $0x250] sm:$0xff] %v512_v23 }
 0x113   : > { %657 = vxpose.xlu1.b32.cont [7/16] %v226_v24, 128  ;;  %v545_v26 = vpop.trf.xlu1  ;;  %625 = vxpose.xlu0.b32.cont [7/16] %v225_v25, 128  ;;  %v513_v27 = vpop.trf.xlu0  ;;  %v348_v24 = vld [vmem:[%s1639_s4 + $0x588] sm:$0xff]  ;;  %v347_v25 = vld [vmem:[%s1639_s4 + $0x580] sm:$0xff] }
 0x114   : > { %1047 = vst [vmem:[%s1713_s18 + $0x360] sm:$0xff] %v545_v26  ;;  %1015 = vst [vmem:[%s1713_s18 + $0x260] sm:$0xff] %v513_v27 }
 0x117   : > { %658 = vxpose.xlu1.b32.cont [8/16] %v234_v28, 128  ;;  %v546_v30 = vpop.trf.xlu1  ;;  %626 = vxpose.xlu0.b32.cont [8/16] %v233_v29, 128  ;;  %v514_v31 = vpop.trf.xlu0  ;;  %v356_v28 = vld [vmem:[%s1639_s4 + $0x5c8] sm:$0xff]  ;;  %v355_v29 = vld [vmem:[%s1639_s4 + $0x5c0] sm:$0xff] }
 0x118   : > { %1049 = vst [vmem:[%s1713_s18 + $0x370] sm:$0xff] %v546_v30  ;;  %1017 = vst [vmem:[%s1713_s18 + $0x270] sm:$0xff] %v514_v31 }
 0x11b   : > { %659 = vxpose.xlu1.b32.cont [9/16] %v242_v32, 128  ;;  %v547_v34 = vpop.trf.xlu1  ;;  %627 = vxpose.xlu0.b32.cont [9/16] %v241_v33, 128  ;;  %v515_v35 = vpop.trf.xlu0  ;;  %v364_v32 = vld [vmem:[%s1639_s4 + $0x608] sm:$0xff]  ;;  %v363_v33 = vld [vmem:[%s1639_s4 + $0x600] sm:$0xff] }
 0x11c   : > { %1051 = vst [vmem:[%s1713_s18 + $0x380] sm:$0xff] %v547_v34  ;;  %1019 = vst [vmem:[%s1713_s18 + $0x280] sm:$0xff] %v515_v35 }
 0x11f   : > { %660 = vxpose.xlu1.b32.cont [10/16] %v250_v36, 128  ;;  %v548_v38 = vpop.trf.xlu1  ;;  %628 = vxpose.xlu0.b32.cont [10/16] %v249_v37, 128  ;;  %v516_v39 = vpop.trf.xlu0  ;;  %v372_v36 = vld [vmem:[%s1639_s4 + $0x648] sm:$0xff]  ;;  %v371_v37 = vld [vmem:[%s1639_s4 + $0x640] sm:$0xff] }
 0x120   : > { %1053 = vst [vmem:[%s1713_s18 + $0x390] sm:$0xff] %v548_v38  ;;  %1021 = vst [vmem:[%s1713_s18 + $0x290] sm:$0xff] %v516_v39 }
 0x123   : > { %661 = vxpose.xlu1.b32.cont [11/16] %v258_v40, 128  ;;  %v549_v42 = vpop.trf.xlu1  ;;  %629 = vxpose.xlu0.b32.cont [11/16] %v257_v41, 128  ;;  %v517_v43 = vpop.trf.xlu0  ;;  %v380_v40 = vld [vmem:[%s1639_s4 + $0x688] sm:$0xff]  ;;  %v379_v41 = vld [vmem:[%s1639_s4 + $0x680] sm:$0xff] }
 0x124   : > { %1055 = vst [vmem:[%s1713_s18 + $0x3a0] sm:$0xff] %v549_v42  ;;  %1023 = vst [vmem:[%s1713_s18 + $0x2a0] sm:$0xff] %v517_v43 }
 0x127   : > { %662 = vxpose.xlu1.b32.cont [12/16] %v266_v44, 128  ;;  %v550_v46 = vpop.trf.xlu1  ;;  %630 = vxpose.xlu0.b32.cont [12/16] %v265_v45, 128  ;;  %v518_v47 = vpop.trf.xlu0  ;;  %v388_v44 = vld [vmem:[%s1639_s4 + $0x6c8] sm:$0xff]  ;;  %v387_v45 = vld [vmem:[%s1639_s4 + $0x6c0] sm:$0xff] }
 0x128   : > { %1057 = vst [vmem:[%s1713_s18 + $0x3b0] sm:$0xff] %v550_v46  ;;  %1025 = vst [vmem:[%s1713_s18 + $0x2b0] sm:$0xff] %v518_v47 }
 0x12b   : > { %663 = vxpose.xlu1.b32.cont [13/16] %v274_v48, 128  ;;  %v551_v50 = vpop.trf.xlu1  ;;  %631 = vxpose.xlu0.b32.cont [13/16] %v273_v49, 128  ;;  %v519_v51 = vpop.trf.xlu0  ;;  %v396_v48 = vld [vmem:[%s1639_s4 + $0x708] sm:$0xff]  ;;  %v395_v49 = vld [vmem:[%s1639_s4 + $0x700] sm:$0xff] }
 0x12c   : > { %1059 = vst [vmem:[%s1713_s18 + $0x3c0] sm:$0xff] %v551_v50  ;;  %1027 = vst [vmem:[%s1713_s18 + $0x2c0] sm:$0xff] %v519_v51 }
 0x12f   : > { %664 = vxpose.xlu1.b32.cont [14/16] %v282_v52, 128  ;;  %v552_v54 = vpop.trf.xlu1  ;;  %632 = vxpose.xlu0.b32.cont [14/16] %v281_v53, 128  ;;  %v520_v55 = vpop.trf.xlu0  ;;  %v404_v52 = vld [vmem:[%s1639_s4 + $0x748] sm:$0xff]  ;;  %v403_v53 = vld [vmem:[%s1639_s4 + $0x740] sm:$0xff] }
 0x130   : > { %1061 = vst [vmem:[%s1713_s18 + $0x3d0] sm:$0xff] %v552_v54  ;;  %1029 = vst [vmem:[%s1713_s18 + $0x2d0] sm:$0xff] %v520_v55 }
 0x133   : > { %665 = vxpose.xlu1.b32.cont [15/16] %v290_v56, 128  ;;  %v553_v58 = vpop.trf.xlu1  ;;  %633 = vxpose.xlu0.b32.cont [15/16] %v289_v57, 128  ;;  %v521_v59 = vpop.trf.xlu0  ;;  %v412_v56 = vld [vmem:[%s1639_s4 + $0x788] sm:$0xff]  ;;  %v411_v57 = vld [vmem:[%s1639_s4 + $0x780] sm:$0xff] }
 0x134   : > { %1063 = vst [vmem:[%s1713_s18 + $0x3e0] sm:$0xff] %v553_v58  ;;  %1031 = vst [vmem:[%s1713_s18 + $0x2e0] sm:$0xff] %v521_v59 }
 0x137   : > { %666 = vxpose.xlu1.b32.end [16/16] %v298_v60, 128  ;;  %v554_v62 = vpop.trf.xlu1  ;;  %634 = vxpose.xlu0.b32.end [16/16] %v297_v61, 128  ;;  %v522_v63 = vpop.trf.xlu0  ;;  %v420_v60 = vld [vmem:[%s1639_s4 + $0x7c8] sm:$0xff]  ;;  %v419_v61 = vld [vmem:[%s1639_s4 + $0x7c0] sm:$0xff] }
 0x138   : > { %1065 = vst [vmem:[%s1713_s18 + $0x3f0] sm:$0xff] %v554_v62  ;;  %1033 = vst [vmem:[%s1713_s18 + $0x2f0] sm:$0xff] %v522_v63 }
 0x13b   : > { %715 = vxpose.xlu1.b32.start [1/16] %v300_v0, 128  ;;  %v603_v2 = vpop.trf.xlu1  ;;  %683 = vxpose.xlu0.b32.start [1/16] %v299_v1, 128  ;;  %v571_v3 = vpop.trf.xlu0  ;;  %v302_v0 = vld [vmem:[%s1639_s4 + $0x418] sm:$0xff]  ;;  %v301_v1 = vld [vmem:[%s1639_s4 + $0x410] sm:$0xff] }
 0x13c   : > { %1099 = vst [vmem:[%s1713_s18 + $0x500] sm:$0xff] %v603_v2  ;;  %1067 = vst [vmem:[%s1713_s18 + $0x400] sm:$0xff] %v571_v3 }
 0x13f   : > { %716 = vxpose.xlu1.b32.cont [2/16] %v308_v4, 128  ;;  %v604_v6 = vpop.trf.xlu1  ;;  %684 = vxpose.xlu0.b32.cont [2/16] %v307_v5, 128  ;;  %v572_v7 = vpop.trf.xlu0  ;;  %v310_v4 = vld [vmem:[%s1639_s4 + $0x458] sm:$0xff]  ;;  %v309_v5 = vld [vmem:[%s1639_s4 + $0x450] sm:$0xff] }
 0x140   : > { %1101 = vst [vmem:[%s1713_s18 + $0x510] sm:$0xff] %v604_v6  ;;  %1069 = vst [vmem:[%s1713_s18 + $0x410] sm:$0xff] %v572_v7 }
 0x143   : > { %717 = vxpose.xlu1.b32.cont [3/16] %v316_v8, 128  ;;  %v605_v10 = vpop.trf.xlu1  ;;  %685 = vxpose.xlu0.b32.cont [3/16] %v315_v9, 128  ;;  %v573_v11 = vpop.trf.xlu0  ;;  %v318_v8 = vld [vmem:[%s1639_s4 + $0x498] sm:$0xff]  ;;  %v317_v9 = vld [vmem:[%s1639_s4 + $0x490] sm:$0xff] }
 0x144   : > { %1103 = vst [vmem:[%s1713_s18 + $0x520] sm:$0xff] %v605_v10  ;;  %1071 = vst [vmem:[%s1713_s18 + $0x420] sm:$0xff] %v573_v11 }
 0x147   : > { %718 = vxpose.xlu1.b32.cont [4/16] %v324_v12, 128  ;;  %v606_v14 = vpop.trf.xlu1  ;;  %686 = vxpose.xlu0.b32.cont [4/16] %v323_v13, 128  ;;  %v574_v15 = vpop.trf.xlu0  ;;  %v326_v12 = vld [vmem:[%s1639_s4 + $0x4d8] sm:$0xff]  ;;  %v325_v13 = vld [vmem:[%s1639_s4 + $0x4d0] sm:$0xff] }
 0x148   : > { %1105 = vst [vmem:[%s1713_s18 + $0x530] sm:$0xff] %v606_v14  ;;  %1073 = vst [vmem:[%s1713_s18 + $0x430] sm:$0xff] %v574_v15 }
 0x14b   : > { %719 = vxpose.xlu1.b32.cont [5/16] %v332_v16, 128  ;;  %v607_v18 = vpop.trf.xlu1  ;;  %687 = vxpose.xlu0.b32.cont [5/16] %v331_v17, 128  ;;  %v575_v19 = vpop.trf.xlu0  ;;  %v334_v16 = vld [vmem:[%s1639_s4 + $0x518] sm:$0xff]  ;;  %v333_v17 = vld [vmem:[%s1639_s4 + $0x510] sm:$0xff] }
 0x14c   : > { %1107 = vst [vmem:[%s1713_s18 + $0x540] sm:$0xff] %v607_v18  ;;  %1075 = vst [vmem:[%s1713_s18 + $0x440] sm:$0xff] %v575_v19 }
 0x14f   : > { %720 = vxpose.xlu1.b32.cont [6/16] %v340_v20, 128  ;;  %v608_v22 = vpop.trf.xlu1  ;;  %688 = vxpose.xlu0.b32.cont [6/16] %v339_v21, 128  ;;  %v576_v23 = vpop.trf.xlu0  ;;  %v342_v20 = vld [vmem:[%s1639_s4 + $0x558] sm:$0xff]  ;;  %v341_v21 = vld [vmem:[%s1639_s4 + $0x550] sm:$0xff] }
 0x150   : > { %1109 = vst [vmem:[%s1713_s18 + $0x550] sm:$0xff] %v608_v22  ;;  %1077 = vst [vmem:[%s1713_s18 + $0x450] sm:$0xff] %v576_v23 }
 0x153   : > { %721 = vxpose.xlu1.b32.cont [7/16] %v348_v24, 128  ;;  %v609_v26 = vpop.trf.xlu1  ;;  %689 = vxpose.xlu0.b32.cont [7/16] %v347_v25, 128  ;;  %v577_v27 = vpop.trf.xlu0  ;;  %v350_v24 = vld [vmem:[%s1639_s4 + $0x598] sm:$0xff]  ;;  %v349_v25 = vld [vmem:[%s1639_s4 + $0x590] sm:$0xff] }
 0x154   : > { %1111 = vst [vmem:[%s1713_s18 + $0x560] sm:$0xff] %v609_v26  ;;  %1079 = vst [vmem:[%s1713_s18 + $0x460] sm:$0xff] %v577_v27 }
 0x157   : > { %722 = vxpose.xlu1.b32.cont [8/16] %v356_v28, 128  ;;  %v610_v30 = vpop.trf.xlu1  ;;  %690 = vxpose.xlu0.b32.cont [8/16] %v355_v29, 128  ;;  %v578_v31 = vpop.trf.xlu0  ;;  %v358_v28 = vld [vmem:[%s1639_s4 + $0x5d8] sm:$0xff]  ;;  %v357_v29 = vld [vmem:[%s1639_s4 + $0x5d0] sm:$0xff] }
 0x158   : > { %1113 = vst [vmem:[%s1713_s18 + $0x570] sm:$0xff] %v610_v30  ;;  %1081 = vst [vmem:[%s1713_s18 + $0x470] sm:$0xff] %v578_v31 }
 0x15b   : > { %723 = vxpose.xlu1.b32.cont [9/16] %v364_v32, 128  ;;  %v611_v34 = vpop.trf.xlu1  ;;  %691 = vxpose.xlu0.b32.cont [9/16] %v363_v33, 128  ;;  %v579_v35 = vpop.trf.xlu0  ;;  %v366_v32 = vld [vmem:[%s1639_s4 + $0x618] sm:$0xff]  ;;  %v365_v33 = vld [vmem:[%s1639_s4 + $0x610] sm:$0xff] }
 0x15c   : > { %1115 = vst [vmem:[%s1713_s18 + $0x580] sm:$0xff] %v611_v34  ;;  %1083 = vst [vmem:[%s1713_s18 + $0x480] sm:$0xff] %v579_v35 }
 0x15f   : > { %724 = vxpose.xlu1.b32.cont [10/16] %v372_v36, 128  ;;  %v612_v38 = vpop.trf.xlu1  ;;  %692 = vxpose.xlu0.b32.cont [10/16] %v371_v37, 128  ;;  %v580_v39 = vpop.trf.xlu0  ;;  %v374_v36 = vld [vmem:[%s1639_s4 + $0x658] sm:$0xff]  ;;  %v373_v37 = vld [vmem:[%s1639_s4 + $0x650] sm:$0xff] }
 0x160   : > { %1117 = vst [vmem:[%s1713_s18 + $0x590] sm:$0xff] %v612_v38  ;;  %1085 = vst [vmem:[%s1713_s18 + $0x490] sm:$0xff] %v580_v39 }
 0x163   : > { %725 = vxpose.xlu1.b32.cont [11/16] %v380_v40, 128  ;;  %v613_v42 = vpop.trf.xlu1  ;;  %693 = vxpose.xlu0.b32.cont [11/16] %v379_v41, 128  ;;  %v581_v43 = vpop.trf.xlu0  ;;  %v382_v40 = vld [vmem:[%s1639_s4 + $0x698] sm:$0xff]  ;;  %v381_v41 = vld [vmem:[%s1639_s4 + $0x690] sm:$0xff] }
 0x164   : > { %1119 = vst [vmem:[%s1713_s18 + $0x5a0] sm:$0xff] %v613_v42  ;;  %1087 = vst [vmem:[%s1713_s18 + $0x4a0] sm:$0xff] %v581_v43 }
 0x167   : > { %726 = vxpose.xlu1.b32.cont [12/16] %v388_v44, 128  ;;  %v614_v46 = vpop.trf.xlu1  ;;  %694 = vxpose.xlu0.b32.cont [12/16] %v387_v45, 128  ;;  %v582_v47 = vpop.trf.xlu0  ;;  %v390_v44 = vld [vmem:[%s1639_s4 + $0x6d8] sm:$0xff]  ;;  %v389_v45 = vld [vmem:[%s1639_s4 + $0x6d0] sm:$0xff] }
 0x168   : > { %1121 = vst [vmem:[%s1713_s18 + $0x5b0] sm:$0xff] %v614_v46  ;;  %1089 = vst [vmem:[%s1713_s18 + $0x4b0] sm:$0xff] %v582_v47 }
 0x16b   : > { %727 = vxpose.xlu1.b32.cont [13/16] %v396_v48, 128  ;;  %v615_v50 = vpop.trf.xlu1  ;;  %695 = vxpose.xlu0.b32.cont [13/16] %v395_v49, 128  ;;  %v583_v51 = vpop.trf.xlu0  ;;  %v398_v48 = vld [vmem:[%s1639_s4 + $0x718] sm:$0xff]  ;;  %v397_v49 = vld [vmem:[%s1639_s4 + $0x710] sm:$0xff] }
 0x16c   : > { %1123 = vst [vmem:[%s1713_s18 + $0x5c0] sm:$0xff] %v615_v50  ;;  %1091 = vst [vmem:[%s1713_s18 + $0x4c0] sm:$0xff] %v583_v51 }
 0x16f   : > { %728 = vxpose.xlu1.b32.cont [14/16] %v404_v52, 128  ;;  %v616_v54 = vpop.trf.xlu1  ;;  %696 = vxpose.xlu0.b32.cont [14/16] %v403_v53, 128  ;;  %v584_v55 = vpop.trf.xlu0  ;;  %v406_v52 = vld [vmem:[%s1639_s4 + $0x758] sm:$0xff]  ;;  %v405_v53 = vld [vmem:[%s1639_s4 + $0x750] sm:$0xff] }
 0x170   : > { %1125 = vst [vmem:[%s1713_s18 + $0x5d0] sm:$0xff] %v616_v54  ;;  %1093 = vst [vmem:[%s1713_s18 + $0x4d0] sm:$0xff] %v584_v55 }
 0x173   : > { %729 = vxpose.xlu1.b32.cont [15/16] %v412_v56, 128  ;;  %v617_v58 = vpop.trf.xlu1  ;;  %697 = vxpose.xlu0.b32.cont [15/16] %v411_v57, 128  ;;  %v585_v59 = vpop.trf.xlu0  ;;  %v414_v56 = vld [vmem:[%s1639_s4 + $0x798] sm:$0xff]  ;;  %v413_v57 = vld [vmem:[%s1639_s4 + $0x790] sm:$0xff] }
 0x174   : > { %1127 = vst [vmem:[%s1713_s18 + $0x5e0] sm:$0xff] %v617_v58  ;;  %1095 = vst [vmem:[%s1713_s18 + $0x4e0] sm:$0xff] %v585_v59 }
 0x177   : > { %730 = vxpose.xlu1.b32.end [16/16] %v420_v60, 128  ;;  %v618_v62 = vpop.trf.xlu1  ;;  %698 = vxpose.xlu0.b32.end [16/16] %v419_v61, 128  ;;  %v586_v63 = vpop.trf.xlu0  ;;  %v422_v60 = vld [vmem:[%s1639_s4 + $0x7d8] sm:$0xff]  ;;  %v421_v61 = vld [vmem:[%s1639_s4 + $0x7d0] sm:$0xff] }
 0x178   : > { %1129 = vst [vmem:[%s1713_s18 + $0x5f0] sm:$0xff] %v618_v62  ;;  %1097 = vst [vmem:[%s1713_s18 + $0x4f0] sm:$0xff] %v586_v63 }
 0x17b   : > { %779 = vxpose.xlu1.b32.start [1/16] %v302_v0, 128  ;;  %v667_v2 = vpop.trf.xlu1  ;;  %747 = vxpose.xlu0.b32.start [1/16] %v301_v1, 128  ;;  %v635_v3 = vpop.trf.xlu0  ;;  %v304_v0 = vld [vmem:[%s1639_s4 + $0x428] sm:$0xff]  ;;  %v303_v1 = vld [vmem:[%s1639_s4 + $0x420] sm:$0xff] }
 0x17c   : > { %1163 = vst [vmem:[%s1713_s18 + $0x700] sm:$0xff] %v667_v2  ;;  %1131 = vst [vmem:[%s1713_s18 + $0x600] sm:$0xff] %v635_v3 }
 0x17f   : > { %780 = vxpose.xlu1.b32.cont [2/16] %v310_v4, 128  ;;  %v668_v6 = vpop.trf.xlu1  ;;  %748 = vxpose.xlu0.b32.cont [2/16] %v309_v5, 128  ;;  %v636_v7 = vpop.trf.xlu0  ;;  %v312_v4 = vld [vmem:[%s1639_s4 + $0x468] sm:$0xff]  ;;  %v311_v5 = vld [vmem:[%s1639_s4 + $0x460] sm:$0xff] }
 0x180   : > { %1165 = vst [vmem:[%s1713_s18 + $0x710] sm:$0xff] %v668_v6  ;;  %1133 = vst [vmem:[%s1713_s18 + $0x610] sm:$0xff] %v636_v7 }
 0x183   : > { %781 = vxpose.xlu1.b32.cont [3/16] %v318_v8, 128  ;;  %v669_v10 = vpop.trf.xlu1  ;;  %749 = vxpose.xlu0.b32.cont [3/16] %v317_v9, 128  ;;  %v637_v11 = vpop.trf.xlu0  ;;  %v320_v8 = vld [vmem:[%s1639_s4 + $0x4a8] sm:$0xff]  ;;  %v319_v9 = vld [vmem:[%s1639_s4 + $0x4a0] sm:$0xff] }
 0x184   : > { %1167 = vst [vmem:[%s1713_s18 + $0x720] sm:$0xff] %v669_v10  ;;  %1135 = vst [vmem:[%s1713_s18 + $0x620] sm:$0xff] %v637_v11 }
 0x187   : > { %782 = vxpose.xlu1.b32.cont [4/16] %v326_v12, 128  ;;  %v670_v14 = vpop.trf.xlu1  ;;  %750 = vxpose.xlu0.b32.cont [4/16] %v325_v13, 128  ;;  %v638_v15 = vpop.trf.xlu0  ;;  %v328_v12 = vld [vmem:[%s1639_s4 + $0x4e8] sm:$0xff]  ;;  %v327_v13 = vld [vmem:[%s1639_s4 + $0x4e0] sm:$0xff] }
 0x188   : > { %1169 = vst [vmem:[%s1713_s18 + $0x730] sm:$0xff] %v670_v14  ;;  %1137 = vst [vmem:[%s1713_s18 + $0x630] sm:$0xff] %v638_v15 }
 0x18b   : > { %783 = vxpose.xlu1.b32.cont [5/16] %v334_v16, 128  ;;  %v671_v18 = vpop.trf.xlu1  ;;  %751 = vxpose.xlu0.b32.cont [5/16] %v333_v17, 128  ;;  %v639_v19 = vpop.trf.xlu0  ;;  %v336_v16 = vld [vmem:[%s1639_s4 + $0x528] sm:$0xff]  ;;  %v335_v17 = vld [vmem:[%s1639_s4 + $0x520] sm:$0xff] }
 0x18c   : > { %1171 = vst [vmem:[%s1713_s18 + $0x740] sm:$0xff] %v671_v18  ;;  %1139 = vst [vmem:[%s1713_s18 + $0x640] sm:$0xff] %v639_v19 }
 0x18f   : > { %784 = vxpose.xlu1.b32.cont [6/16] %v342_v20, 128  ;;  %v672_v22 = vpop.trf.xlu1  ;;  %752 = vxpose.xlu0.b32.cont [6/16] %v341_v21, 128  ;;  %v640_v23 = vpop.trf.xlu0  ;;  %v344_v20 = vld [vmem:[%s1639_s4 + $0x568] sm:$0xff]  ;;  %v343_v21 = vld [vmem:[%s1639_s4 + $0x560] sm:$0xff] }
 0x190   : > { %1173 = vst [vmem:[%s1713_s18 + $0x750] sm:$0xff] %v672_v22  ;;  %1141 = vst [vmem:[%s1713_s18 + $0x650] sm:$0xff] %v640_v23 }
 0x193   : > { %785 = vxpose.xlu1.b32.cont [7/16] %v350_v24, 128  ;;  %v673_v26 = vpop.trf.xlu1  ;;  %753 = vxpose.xlu0.b32.cont [7/16] %v349_v25, 128  ;;  %v641_v27 = vpop.trf.xlu0  ;;  %v352_v24 = vld [vmem:[%s1639_s4 + $0x5a8] sm:$0xff]  ;;  %v351_v25 = vld [vmem:[%s1639_s4 + $0x5a0] sm:$0xff] }
 0x194   : > { %1175 = vst [vmem:[%s1713_s18 + $0x760] sm:$0xff] %v673_v26  ;;  %1143 = vst [vmem:[%s1713_s18 + $0x660] sm:$0xff] %v641_v27 }
 0x197   : > { %786 = vxpose.xlu1.b32.cont [8/16] %v358_v28, 128  ;;  %v674_v30 = vpop.trf.xlu1  ;;  %754 = vxpose.xlu0.b32.cont [8/16] %v357_v29, 128  ;;  %v642_v31 = vpop.trf.xlu0  ;;  %v360_v28 = vld [vmem:[%s1639_s4 + $0x5e8] sm:$0xff]  ;;  %v359_v29 = vld [vmem:[%s1639_s4 + $0x5e0] sm:$0xff] }
 0x198   : > { %1177 = vst [vmem:[%s1713_s18 + $0x770] sm:$0xff] %v674_v30  ;;  %1145 = vst [vmem:[%s1713_s18 + $0x670] sm:$0xff] %v642_v31 }
 0x19b   : > { %787 = vxpose.xlu1.b32.cont [9/16] %v366_v32, 128  ;;  %v675_v34 = vpop.trf.xlu1  ;;  %755 = vxpose.xlu0.b32.cont [9/16] %v365_v33, 128  ;;  %v643_v35 = vpop.trf.xlu0  ;;  %v368_v32 = vld [vmem:[%s1639_s4 + $0x628] sm:$0xff]  ;;  %v367_v33 = vld [vmem:[%s1639_s4 + $0x620] sm:$0xff] }
 0x19c   : > { %1179 = vst [vmem:[%s1713_s18 + $0x780] sm:$0xff] %v675_v34  ;;  %1147 = vst [vmem:[%s1713_s18 + $0x680] sm:$0xff] %v643_v35 }
 0x19f   : > { %788 = vxpose.xlu1.b32.cont [10/16] %v374_v36, 128  ;;  %v676_v38 = vpop.trf.xlu1  ;;  %756 = vxpose.xlu0.b32.cont [10/16] %v373_v37, 128  ;;  %v644_v39 = vpop.trf.xlu0  ;;  %v376_v36 = vld [vmem:[%s1639_s4 + $0x668] sm:$0xff]  ;;  %v375_v37 = vld [vmem:[%s1639_s4 + $0x660] sm:$0xff] }
 0x1a0   : > { %1181 = vst [vmem:[%s1713_s18 + $0x790] sm:$0xff] %v676_v38  ;;  %1149 = vst [vmem:[%s1713_s18 + $0x690] sm:$0xff] %v644_v39 }
 0x1a3   : > { %789 = vxpose.xlu1.b32.cont [11/16] %v382_v40, 128  ;;  %v677_v42 = vpop.trf.xlu1  ;;  %757 = vxpose.xlu0.b32.cont [11/16] %v381_v41, 128  ;;  %v645_v43 = vpop.trf.xlu0  ;;  %v384_v40 = vld [vmem:[%s1639_s4 + $0x6a8] sm:$0xff]  ;;  %v383_v41 = vld [vmem:[%s1639_s4 + $0x6a0] sm:$0xff] }
 0x1a4   : > { %1183 = vst [vmem:[%s1713_s18 + $0x7a0] sm:$0xff] %v677_v42  ;;  %1151 = vst [vmem:[%s1713_s18 + $0x6a0] sm:$0xff] %v645_v43 }
 0x1a7   : > { %790 = vxpose.xlu1.b32.cont [12/16] %v390_v44, 128  ;;  %v678_v46 = vpop.trf.xlu1  ;;  %758 = vxpose.xlu0.b32.cont [12/16] %v389_v45, 128  ;;  %v646_v47 = vpop.trf.xlu0  ;;  %v392_v44 = vld [vmem:[%s1639_s4 + $0x6e8] sm:$0xff]  ;;  %v391_v45 = vld [vmem:[%s1639_s4 + $0x6e0] sm:$0xff] }
 0x1a8   : > { %1185 = vst [vmem:[%s1713_s18 + $0x7b0] sm:$0xff] %v678_v46  ;;  %1153 = vst [vmem:[%s1713_s18 + $0x6b0] sm:$0xff] %v646_v47 }
 0x1ab   : > { %791 = vxpose.xlu1.b32.cont [13/16] %v398_v48, 128  ;;  %v679_v50 = vpop.trf.xlu1  ;;  %759 = vxpose.xlu0.b32.cont [13/16] %v397_v49, 128  ;;  %v647_v51 = vpop.trf.xlu0  ;;  %v400_v48 = vld [vmem:[%s1639_s4 + $0x728] sm:$0xff]  ;;  %v399_v49 = vld [vmem:[%s1639_s4 + $0x720] sm:$0xff] }
 0x1ac   : > { %1187 = vst [vmem:[%s1713_s18 + $0x7c0] sm:$0xff] %v679_v50  ;;  %1155 = vst [vmem:[%s1713_s18 + $0x6c0] sm:$0xff] %v647_v51 }
 0x1af   : > { %792 = vxpose.xlu1.b32.cont [14/16] %v406_v52, 128  ;;  %v680_v54 = vpop.trf.xlu1  ;;  %760 = vxpose.xlu0.b32.cont [14/16] %v405_v53, 128  ;;  %v648_v55 = vpop.trf.xlu0  ;;  %v408_v52 = vld [vmem:[%s1639_s4 + $0x768] sm:$0xff]  ;;  %v407_v53 = vld [vmem:[%s1639_s4 + $0x760] sm:$0xff] }
 0x1b0   : > { %1189 = vst [vmem:[%s1713_s18 + $0x7d0] sm:$0xff] %v680_v54  ;;  %1157 = vst [vmem:[%s1713_s18 + $0x6d0] sm:$0xff] %v648_v55 }
 0x1b3   : > { %793 = vxpose.xlu1.b32.cont [15/16] %v414_v56, 128  ;;  %v681_v58 = vpop.trf.xlu1  ;;  %761 = vxpose.xlu0.b32.cont [15/16] %v413_v57, 128  ;;  %v649_v59 = vpop.trf.xlu0  ;;  %v416_v56 = vld [vmem:[%s1639_s4 + $0x7a8] sm:$0xff]  ;;  %v415_v57 = vld [vmem:[%s1639_s4 + $0x7a0] sm:$0xff] }
 0x1b4   : > { %1191 = vst [vmem:[%s1713_s18 + $0x7e0] sm:$0xff] %v681_v58  ;;  %1159 = vst [vmem:[%s1713_s18 + $0x6e0] sm:$0xff] %v649_v59 }
 0x1b7   : > { %794 = vxpose.xlu1.b32.end [16/16] %v422_v60, 128  ;;  %v682_v62 = vpop.trf.xlu1  ;;  %762 = vxpose.xlu0.b32.end [16/16] %v421_v61, 128  ;;  %v650_v63 = vpop.trf.xlu0  ;;  %v424_v60 = vld [vmem:[%s1639_s4 + $0x7e8] sm:$0xff]  ;;  %v423_v61 = vld [vmem:[%s1639_s4 + $0x7e0] sm:$0xff] }
 0x1b8   : > { %1193 = vst [vmem:[%s1713_s18 + $0x7f0] sm:$0xff] %v682_v62  ;;  %1161 = vst [vmem:[%s1713_s18 + $0x6f0] sm:$0xff] %v650_v63 }
 0x1bb   : > { %843 = vxpose.xlu1.b32.start [1/16] %v304_v0, 128  ;;  %v731_v2 = vpop.trf.xlu1  ;;  %811 = vxpose.xlu0.b32.start [1/16] %v303_v1, 128  ;;  %v699_v3 = vpop.trf.xlu0  ;;  %v306_v0 = vld [vmem:[%s1639_s4 + $0x438] sm:$0xff]  ;;  %v305_v1 = vld [vmem:[%s1639_s4 + $0x430] sm:$0xff] }
 0x1bc   : > { %972 = vst [vmem:[%s1713_s18 + $0x108] sm:$0xff] %v731_v2  ;;  %940 = vst [vmem:[%s1713_s18 + $0x8] sm:$0xff] %v699_v3 }
 0x1bf   : > { %844 = vxpose.xlu1.b32.cont [2/16] %v312_v4, 128  ;;  %v732_v6 = vpop.trf.xlu1  ;;  %812 = vxpose.xlu0.b32.cont [2/16] %v311_v5, 128  ;;  %v700_v7 = vpop.trf.xlu0  ;;  %v314_v4 = vld [vmem:[%s1639_s4 + $0x478] sm:$0xff]  ;;  %v313_v5 = vld [vmem:[%s1639_s4 + $0x470] sm:$0xff] }
 0x1c0   : > { %974 = vst [vmem:[%s1713_s18 + $0x118] sm:$0xff] %v732_v6  ;;  %942 = vst [vmem:[%s1713_s18 + $0x18] sm:$0xff] %v700_v7 }
 0x1c3   : > { %845 = vxpose.xlu1.b32.cont [3/16] %v320_v8, 128  ;;  %v733_v10 = vpop.trf.xlu1  ;;  %813 = vxpose.xlu0.b32.cont [3/16] %v319_v9, 128  ;;  %v701_v11 = vpop.trf.xlu0  ;;  %v322_v8 = vld [vmem:[%s1639_s4 + $0x4b8] sm:$0xff]  ;;  %v321_v9 = vld [vmem:[%s1639_s4 + $0x4b0] sm:$0xff] }
 0x1c4   : > { %976 = vst [vmem:[%s1713_s18 + $0x128] sm:$0xff] %v733_v10  ;;  %944 = vst [vmem:[%s1713_s18 + $0x28] sm:$0xff] %v701_v11 }
 0x1c7   : > { %846 = vxpose.xlu1.b32.cont [4/16] %v328_v12, 128  ;;  %v734_v14 = vpop.trf.xlu1  ;;  %814 = vxpose.xlu0.b32.cont [4/16] %v327_v13, 128  ;;  %v702_v15 = vpop.trf.xlu0  ;;  %v330_v12 = vld [vmem:[%s1639_s4 + $0x4f8] sm:$0xff]  ;;  %v329_v13 = vld [vmem:[%s1639_s4 + $0x4f0] sm:$0xff] }
 0x1c8   : > { %978 = vst [vmem:[%s1713_s18 + $0x138] sm:$0xff] %v734_v14  ;;  %946 = vst [vmem:[%s1713_s18 + $0x38] sm:$0xff] %v702_v15 }
 0x1cb   : > { %847 = vxpose.xlu1.b32.cont [5/16] %v336_v16, 128  ;;  %v735_v18 = vpop.trf.xlu1  ;;  %815 = vxpose.xlu0.b32.cont [5/16] %v335_v17, 128  ;;  %v703_v19 = vpop.trf.xlu0  ;;  %v338_v16 = vld [vmem:[%s1639_s4 + $0x538] sm:$0xff]  ;;  %v337_v17 = vld [vmem:[%s1639_s4 + $0x530] sm:$0xff] }
 0x1cc   : > { %980 = vst [vmem:[%s1713_s18 + $0x148] sm:$0xff] %v735_v18  ;;  %948 = vst [vmem:[%s1713_s18 + $0x48] sm:$0xff] %v703_v19 }
 0x1cf   : > { %848 = vxpose.xlu1.b32.cont [6/16] %v344_v20, 128  ;;  %v736_v22 = vpop.trf.xlu1  ;;  %816 = vxpose.xlu0.b32.cont [6/16] %v343_v21, 128  ;;  %v704_v23 = vpop.trf.xlu0  ;;  %v346_v20 = vld [vmem:[%s1639_s4 + $0x578] sm:$0xff]  ;;  %v345_v21 = vld [vmem:[%s1639_s4 + $0x570] sm:$0xff] }
 0x1d0   : > { %982 = vst [vmem:[%s1713_s18 + $0x158] sm:$0xff] %v736_v22  ;;  %950 = vst [vmem:[%s1713_s18 + $0x58] sm:$0xff] %v704_v23 }
 0x1d3   : > { %849 = vxpose.xlu1.b32.cont [7/16] %v352_v24, 128  ;;  %v737_v26 = vpop.trf.xlu1  ;;  %817 = vxpose.xlu0.b32.cont [7/16] %v351_v25, 128  ;;  %v705_v27 = vpop.trf.xlu0  ;;  %v354_v24 = vld [vmem:[%s1639_s4 + $0x5b8] sm:$0xff]  ;;  %v353_v25 = vld [vmem:[%s1639_s4 + $0x5b0] sm:$0xff] }
 0x1d4   : > { %984 = vst [vmem:[%s1713_s18 + $0x168] sm:$0xff] %v737_v26  ;;  %952 = vst [vmem:[%s1713_s18 + $0x68] sm:$0xff] %v705_v27 }
 0x1d7   : > { %850 = vxpose.xlu1.b32.cont [8/16] %v360_v28, 128  ;;  %v738_v30 = vpop.trf.xlu1  ;;  %818 = vxpose.xlu0.b32.cont [8/16] %v359_v29, 128  ;;  %v706_v31 = vpop.trf.xlu0  ;;  %v362_v28 = vld [vmem:[%s1639_s4 + $0x5f8] sm:$0xff]  ;;  %v361_v29 = vld [vmem:[%s1639_s4 + $0x5f0] sm:$0xff] }
 0x1d8   : > { %986 = vst [vmem:[%s1713_s18 + $0x178] sm:$0xff] %v738_v30  ;;  %954 = vst [vmem:[%s1713_s18 + $0x78] sm:$0xff] %v706_v31 }
 0x1db   : > { %851 = vxpose.xlu1.b32.cont [9/16] %v368_v32, 128  ;;  %v739_v34 = vpop.trf.xlu1  ;;  %819 = vxpose.xlu0.b32.cont [9/16] %v367_v33, 128  ;;  %v707_v35 = vpop.trf.xlu0  ;;  %v370_v32 = vld [vmem:[%s1639_s4 + $0x638] sm:$0xff]  ;;  %v369_v33 = vld [vmem:[%s1639_s4 + $0x630] sm:$0xff] }
 0x1dc   : > { %988 = vst [vmem:[%s1713_s18 + $0x188] sm:$0xff] %v739_v34  ;;  %956 = vst [vmem:[%s1713_s18 + $0x88] sm:$0xff] %v707_v35 }
 0x1df   : > { %852 = vxpose.xlu1.b32.cont [10/16] %v376_v36, 128  ;;  %v740_v38 = vpop.trf.xlu1  ;;  %820 = vxpose.xlu0.b32.cont [10/16] %v375_v37, 128  ;;  %v708_v39 = vpop.trf.xlu0  ;;  %v378_v36 = vld [vmem:[%s1639_s4 + $0x678] sm:$0xff]  ;;  %v377_v37 = vld [vmem:[%s1639_s4 + $0x670] sm:$0xff] }
 0x1e0   : > { %990 = vst [vmem:[%s1713_s18 + $0x198] sm:$0xff] %v740_v38  ;;  %958 = vst [vmem:[%s1713_s18 + $0x98] sm:$0xff] %v708_v39 }
 0x1e3   : > { %853 = vxpose.xlu1.b32.cont [11/16] %v384_v40, 128  ;;  %v741_v42 = vpop.trf.xlu1  ;;  %821 = vxpose.xlu0.b32.cont [11/16] %v383_v41, 128  ;;  %v709_v43 = vpop.trf.xlu0  ;;  %v386_v40 = vld [vmem:[%s1639_s4 + $0x6b8] sm:$0xff]  ;;  %v385_v41 = vld [vmem:[%s1639_s4 + $0x6b0] sm:$0xff] }
 0x1e4   : > { %992 = vst [vmem:[%s1713_s18 + $0x1a8] sm:$0xff] %v741_v42  ;;  %960 = vst [vmem:[%s1713_s18 + $0xa8] sm:$0xff] %v709_v43 }
 0x1e7   : > { %854 = vxpose.xlu1.b32.cont [12/16] %v392_v44, 128  ;;  %v742_v46 = vpop.trf.xlu1  ;;  %822 = vxpose.xlu0.b32.cont [12/16] %v391_v45, 128  ;;  %v710_v47 = vpop.trf.xlu0  ;;  %v394_v44 = vld [vmem:[%s1639_s4 + $0x6f8] sm:$0xff]  ;;  %v393_v45 = vld [vmem:[%s1639_s4 + $0x6f0] sm:$0xff] }
 0x1e8   : > { %994 = vst [vmem:[%s1713_s18 + $0x1b8] sm:$0xff] %v742_v46  ;;  %962 = vst [vmem:[%s1713_s18 + $0xb8] sm:$0xff] %v710_v47 }
 0x1eb   : > { %855 = vxpose.xlu1.b32.cont [13/16] %v400_v48, 128  ;;  %v743_v50 = vpop.trf.xlu1  ;;  %823 = vxpose.xlu0.b32.cont [13/16] %v399_v49, 128  ;;  %v711_v51 = vpop.trf.xlu0  ;;  %v402_v48 = vld [vmem:[%s1639_s4 + $0x738] sm:$0xff]  ;;  %v401_v49 = vld [vmem:[%s1639_s4 + $0x730] sm:$0xff] }
 0x1ec   : > { %996 = vst [vmem:[%s1713_s18 + $0x1c8] sm:$0xff] %v743_v50  ;;  %964 = vst [vmem:[%s1713_s18 + $0xc8] sm:$0xff] %v711_v51 }
 0x1ef   : > { %856 = vxpose.xlu1.b32.cont [14/16] %v408_v52, 128  ;;  %v744_v54 = vpop.trf.xlu1  ;;  %824 = vxpose.xlu0.b32.cont [14/16] %v407_v53, 128  ;;  %v712_v55 = vpop.trf.xlu0  ;;  %v410_v52 = vld [vmem:[%s1639_s4 + $0x778] sm:$0xff]  ;;  %v409_v53 = vld [vmem:[%s1639_s4 + $0x770] sm:$0xff] }
 0x1f0   : > { %998 = vst [vmem:[%s1713_s18 + $0x1d8] sm:$0xff] %v744_v54  ;;  %966 = vst [vmem:[%s1713_s18 + $0xd8] sm:$0xff] %v712_v55 }
 0x1f3   : > { %857 = vxpose.xlu1.b32.cont [15/16] %v416_v56, 128  ;;  %v745_v58 = vpop.trf.xlu1  ;;  %825 = vxpose.xlu0.b32.cont [15/16] %v415_v57, 128  ;;  %v713_v59 = vpop.trf.xlu0  ;;  %v418_v56 = vld [vmem:[%s1639_s4 + $0x7b8] sm:$0xff]  ;;  %v417_v57 = vld [vmem:[%s1639_s4 + $0x7b0] sm:$0xff] }
 0x1f4   : > { %1000 = vst [vmem:[%s1713_s18 + $0x1e8] sm:$0xff] %v745_v58  ;;  %968 = vst [vmem:[%s1713_s18 + $0xe8] sm:$0xff] %v713_v59 }
 0x1f7   : > { %858 = vxpose.xlu1.b32.end [16/16] %v424_v60, 128  ;;  %v746_v62 = vpop.trf.xlu1  ;;  %826 = vxpose.xlu0.b32.end [16/16] %v423_v61, 128  ;;  %v714_v63 = vpop.trf.xlu0  ;;  %v426_v60 = vld [vmem:[%s1639_s4 + $0x7f8] sm:$0xff]  ;;  %v425_v61 = vld [vmem:[%s1639_s4 + $0x7f0] sm:$0xff] }
 0x1f8   : > { %1002 = vst [vmem:[%s1713_s18 + $0x1f8] sm:$0xff] %v746_v62  ;;  %970 = vst [vmem:[%s1713_s18 + $0xf8] sm:$0xff] %v714_v63 }
 0x1fb   : > { %907 = vxpose.xlu1.b32.start [1/16] %v306_v0, 128  ;;  %v795_v2 = vpop.trf.xlu1  ;;  %875 = vxpose.xlu0.b32.start [1/16] %v305_v1, 128  ;;  %v763_v3 = vpop.trf.xlu0 }
 0x1fc   : > { %1036 = vst [vmem:[%s1713_s18 + $0x308] sm:$0xff] %v795_v2  ;;  %1004 = vst [vmem:[%s1713_s18 + $0x208] sm:$0xff] %v763_v3 }
 0x1ff   : > { %908 = vxpose.xlu1.b32.cont [2/16] %v314_v4, 128  ;;  %v796_v6 = vpop.trf.xlu1  ;;  %876 = vxpose.xlu0.b32.cont [2/16] %v313_v5, 128  ;;  %v764_v7 = vpop.trf.xlu0 }
 0x200   : > { %1038 = vst [vmem:[%s1713_s18 + $0x318] sm:$0xff] %v796_v6  ;;  %1006 = vst [vmem:[%s1713_s18 + $0x218] sm:$0xff] %v764_v7 }
 0x203   : > { %909 = vxpose.xlu1.b32.cont [3/16] %v322_v8, 128  ;;  %v797_v10 = vpop.trf.xlu1  ;;  %877 = vxpose.xlu0.b32.cont [3/16] %v321_v9, 128  ;;  %v765_v11 = vpop.trf.xlu0 }
 0x204   : > { %1040 = vst [vmem:[%s1713_s18 + $0x328] sm:$0xff] %v797_v10  ;;  %1008 = vst [vmem:[%s1713_s18 + $0x228] sm:$0xff] %v765_v11 }
 0x207   : > { %910 = vxpose.xlu1.b32.cont [4/16] %v330_v12, 128  ;;  %v798_v14 = vpop.trf.xlu1  ;;  %878 = vxpose.xlu0.b32.cont [4/16] %v329_v13, 128  ;;  %v766_v15 = vpop.trf.xlu0 }
 0x208   : > { %1042 = vst [vmem:[%s1713_s18 + $0x338] sm:$0xff] %v798_v14  ;;  %1010 = vst [vmem:[%s1713_s18 + $0x238] sm:$0xff] %v766_v15 }
 0x20b   : > { %911 = vxpose.xlu1.b32.cont [5/16] %v338_v16, 128  ;;  %v799_v18 = vpop.trf.xlu1  ;;  %879 = vxpose.xlu0.b32.cont [5/16] %v337_v17, 128  ;;  %v767_v19 = vpop.trf.xlu0 }
 0x20c   : > { %1044 = vst [vmem:[%s1713_s18 + $0x348] sm:$0xff] %v799_v18  ;;  %1012 = vst [vmem:[%s1713_s18 + $0x248] sm:$0xff] %v767_v19 }
 0x20f   : > { %912 = vxpose.xlu1.b32.cont [6/16] %v346_v20, 128  ;;  %v800_v22 = vpop.trf.xlu1  ;;  %880 = vxpose.xlu0.b32.cont [6/16] %v345_v21, 128  ;;  %v768_v23 = vpop.trf.xlu0 }
 0x210   : > { %1046 = vst [vmem:[%s1713_s18 + $0x358] sm:$0xff] %v800_v22  ;;  %1014 = vst [vmem:[%s1713_s18 + $0x258] sm:$0xff] %v768_v23 }
 0x213   : > { %913 = vxpose.xlu1.b32.cont [7/16] %v354_v24, 128  ;;  %v801_v26 = vpop.trf.xlu1  ;;  %881 = vxpose.xlu0.b32.cont [7/16] %v353_v25, 128  ;;  %v769_v27 = vpop.trf.xlu0 }
 0x214   : > { %1048 = vst [vmem:[%s1713_s18 + $0x368] sm:$0xff] %v801_v26  ;;  %1016 = vst [vmem:[%s1713_s18 + $0x268] sm:$0xff] %v769_v27 }
 0x217   : > { %914 = vxpose.xlu1.b32.cont [8/16] %v362_v28, 128  ;;  %v802_v30 = vpop.trf.xlu1  ;;  %882 = vxpose.xlu0.b32.cont [8/16] %v361_v29, 128  ;;  %v770_v31 = vpop.trf.xlu0 }
 0x218   : > { %1050 = vst [vmem:[%s1713_s18 + $0x378] sm:$0xff] %v802_v30  ;;  %1018 = vst [vmem:[%s1713_s18 + $0x278] sm:$0xff] %v770_v31 }
 0x21b   : > { %915 = vxpose.xlu1.b32.cont [9/16] %v370_v32, 128  ;;  %v803_v34 = vpop.trf.xlu1  ;;  %883 = vxpose.xlu0.b32.cont [9/16] %v369_v33, 128  ;;  %v771_v35 = vpop.trf.xlu0 }
 0x21c   : > { %1052 = vst [vmem:[%s1713_s18 + $0x388] sm:$0xff] %v803_v34  ;;  %1020 = vst [vmem:[%s1713_s18 + $0x288] sm:$0xff] %v771_v35 }
 0x21f   : > { %916 = vxpose.xlu1.b32.cont [10/16] %v378_v36, 128  ;;  %v804_v38 = vpop.trf.xlu1  ;;  %884 = vxpose.xlu0.b32.cont [10/16] %v377_v37, 128  ;;  %v772_v39 = vpop.trf.xlu0 }
 0x220   : > { %1054 = vst [vmem:[%s1713_s18 + $0x398] sm:$0xff] %v804_v38  ;;  %1022 = vst [vmem:[%s1713_s18 + $0x298] sm:$0xff] %v772_v39 }
 0x223   : > { %917 = vxpose.xlu1.b32.cont [11/16] %v386_v40, 128  ;;  %v805_v42 = vpop.trf.xlu1  ;;  %885 = vxpose.xlu0.b32.cont [11/16] %v385_v41, 128  ;;  %v773_v43 = vpop.trf.xlu0 }
 0x224   : > { %1056 = vst [vmem:[%s1713_s18 + $0x3a8] sm:$0xff] %v805_v42  ;;  %1024 = vst [vmem:[%s1713_s18 + $0x2a8] sm:$0xff] %v773_v43 }
 0x227   : > { %918 = vxpose.xlu1.b32.cont [12/16] %v394_v44, 128  ;;  %v806_v46 = vpop.trf.xlu1  ;;  %886 = vxpose.xlu0.b32.cont [12/16] %v393_v45, 128  ;;  %v774_v47 = vpop.trf.xlu0 }
 0x228   : > { %1058 = vst [vmem:[%s1713_s18 + $0x3b8] sm:$0xff] %v806_v46  ;;  %1026 = vst [vmem:[%s1713_s18 + $0x2b8] sm:$0xff] %v774_v47 }
 0x22b   : > { %919 = vxpose.xlu1.b32.cont [13/16] %v402_v48, 128  ;;  %v807_v50 = vpop.trf.xlu1  ;;  %887 = vxpose.xlu0.b32.cont [13/16] %v401_v49, 128  ;;  %v775_v51 = vpop.trf.xlu0 }
 0x22c   : > { %1060 = vst [vmem:[%s1713_s18 + $0x3c8] sm:$0xff] %v807_v50  ;;  %1028 = vst [vmem:[%s1713_s18 + $0x2c8] sm:$0xff] %v775_v51 }
 0x22f   : > { %920 = vxpose.xlu1.b32.cont [14/16] %v410_v52, 128  ;;  %v808_v54 = vpop.trf.xlu1  ;;  %888 = vxpose.xlu0.b32.cont [14/16] %v409_v53, 128  ;;  %v776_v55 = vpop.trf.xlu0 }
 0x230   : > { %1062 = vst [vmem:[%s1713_s18 + $0x3d8] sm:$0xff] %v808_v54  ;;  %1030 = vst [vmem:[%s1713_s18 + $0x2d8] sm:$0xff] %v776_v55 }
 0x233   : > { %921 = vxpose.xlu1.b32.cont [15/16] %v418_v56, 128  ;;  %v809_v58 = vpop.trf.xlu1  ;;  %889 = vxpose.xlu0.b32.cont [15/16] %v417_v57, 128  ;;  %v777_v59 = vpop.trf.xlu0 }
 0x234   : > { %1064 = vst [vmem:[%s1713_s18 + $0x3e8] sm:$0xff] %v809_v58  ;;  %1032 = vst [vmem:[%s1713_s18 + $0x2e8] sm:$0xff] %v777_v59 }
 0x237   : > { %922 = vxpose.xlu1.b32.end [16/16] %v426_v60, 128  ;;  %v810_v62 = vpop.trf.xlu1  ;;  %890 = vxpose.xlu0.b32.end [16/16] %v425_v61, 128  ;;  %v778_v63 = vpop.trf.xlu0 }
 0x238   : > { %1066 = vst [vmem:[%s1713_s18 + $0x3f8] sm:$0xff] %v810_v62  ;;  %1034 = vst [vmem:[%s1713_s18 + $0x2f8] sm:$0xff] %v778_v63 }
 0x23b   : > { %v859_v0 = vpop.trf.xlu1  ;;  %v827_v1 = vpop.trf.xlu0 }
 0x23c   : > { %1100 = vst [vmem:[%s1713_s18 + $0x508] sm:$0xff] %v859_v0  ;;  %1068 = vst [vmem:[%s1713_s18 + $0x408] sm:$0xff] %v827_v1 }
 0x23f   : > { %v860_v2 = vpop.trf.xlu1  ;;  %v828_v3 = vpop.trf.xlu0 }
 0x240   : > { %1102 = vst [vmem:[%s1713_s18 + $0x518] sm:$0xff] %v860_v2  ;;  %1070 = vst [vmem:[%s1713_s18 + $0x418] sm:$0xff] %v828_v3 }
 0x243   : > { %v861_v4 = vpop.trf.xlu1  ;;  %v829_v5 = vpop.trf.xlu0 }
 0x244   : > { %1104 = vst [vmem:[%s1713_s18 + $0x528] sm:$0xff] %v861_v4  ;;  %1072 = vst [vmem:[%s1713_s18 + $0x428] sm:$0xff] %v829_v5 }
 0x247   : > { %v862_v6 = vpop.trf.xlu1  ;;  %v830_v7 = vpop.trf.xlu0 }
 0x248   : > { %1106 = vst [vmem:[%s1713_s18 + $0x538] sm:$0xff] %v862_v6  ;;  %1074 = vst [vmem:[%s1713_s18 + $0x438] sm:$0xff] %v830_v7 }
 0x24b   : > { %v863_v8 = vpop.trf.xlu1  ;;  %v831_v9 = vpop.trf.xlu0 }
 0x24c   : > { %1108 = vst [vmem:[%s1713_s18 + $0x548] sm:$0xff] %v863_v8  ;;  %1076 = vst [vmem:[%s1713_s18 + $0x448] sm:$0xff] %v831_v9 }
 0x24f   : > { %v864_v10 = vpop.trf.xlu1  ;;  %v832_v11 = vpop.trf.xlu0 }
 0x250   : > { %1110 = vst [vmem:[%s1713_s18 + $0x558] sm:$0xff] %v864_v10  ;;  %1078 = vst [vmem:[%s1713_s18 + $0x458] sm:$0xff] %v832_v11 }
 0x253   : > { %v865_v12 = vpop.trf.xlu1  ;;  %v833_v13 = vpop.trf.xlu0 }
 0x254   : > { %1112 = vst [vmem:[%s1713_s18 + $0x568] sm:$0xff] %v865_v12  ;;  %1080 = vst [vmem:[%s1713_s18 + $0x468] sm:$0xff] %v833_v13 }
 0x257   : > { %v866_v14 = vpop.trf.xlu1  ;;  %v834_v15 = vpop.trf.xlu0 }
 0x258   : > { %1114 = vst [vmem:[%s1713_s18 + $0x578] sm:$0xff] %v866_v14  ;;  %1082 = vst [vmem:[%s1713_s18 + $0x478] sm:$0xff] %v834_v15 }
 0x25b   : > { %v867_v16 = vpop.trf.xlu1  ;;  %v835_v17 = vpop.trf.xlu0 }
 0x25c   : > { %1116 = vst [vmem:[%s1713_s18 + $0x588] sm:$0xff] %v867_v16  ;;  %1084 = vst [vmem:[%s1713_s18 + $0x488] sm:$0xff] %v835_v17 }
 0x25f   : > { %v868_v18 = vpop.trf.xlu1  ;;  %v836_v19 = vpop.trf.xlu0 }
 0x260   : > { %1118 = vst [vmem:[%s1713_s18 + $0x598] sm:$0xff] %v868_v18  ;;  %1086 = vst [vmem:[%s1713_s18 + $0x498] sm:$0xff] %v836_v19 }
 0x263   : > { %v869_v20 = vpop.trf.xlu1  ;;  %v837_v21 = vpop.trf.xlu0 }
 0x264   : > { %1120 = vst [vmem:[%s1713_s18 + $0x5a8] sm:$0xff] %v869_v20  ;;  %1088 = vst [vmem:[%s1713_s18 + $0x4a8] sm:$0xff] %v837_v21 }
 0x267   : > { %v870_v22 = vpop.trf.xlu1  ;;  %v838_v23 = vpop.trf.xlu0 }
 0x268   : > { %1122 = vst [vmem:[%s1713_s18 + $0x5b8] sm:$0xff] %v870_v22  ;;  %1090 = vst [vmem:[%s1713_s18 + $0x4b8] sm:$0xff] %v838_v23 }
 0x26b   : > { %v871_v24 = vpop.trf.xlu1  ;;  %v839_v25 = vpop.trf.xlu0 }
 0x26c   : > { %1124 = vst [vmem:[%s1713_s18 + $0x5c8] sm:$0xff] %v871_v24  ;;  %1092 = vst [vmem:[%s1713_s18 + $0x4c8] sm:$0xff] %v839_v25 }
 0x26f   : > { %v872_v26 = vpop.trf.xlu1  ;;  %v840_v27 = vpop.trf.xlu0 }
 0x270   : > { %1126 = vst [vmem:[%s1713_s18 + $0x5d8] sm:$0xff] %v872_v26  ;;  %1094 = vst [vmem:[%s1713_s18 + $0x4d8] sm:$0xff] %v840_v27 }
 0x273   : > { %v873_v28 = vpop.trf.xlu1  ;;  %v841_v29 = vpop.trf.xlu0 }
 0x274   : > { %1128 = vst [vmem:[%s1713_s18 + $0x5e8] sm:$0xff] %v873_v28  ;;  %1096 = vst [vmem:[%s1713_s18 + $0x4e8] sm:$0xff] %v841_v29 }
 0x277   : > { %v874_v30 = vpop.trf.xlu1  ;;  %v842_v31 = vpop.trf.xlu0 }
 0x278   : > { %1130 = vst [vmem:[%s1713_s18 + $0x5f8] sm:$0xff] %v874_v30  ;;  %1098 = vst [vmem:[%s1713_s18 + $0x4f8] sm:$0xff] %v842_v31 }
 0x27b   : > { %v923_v32 = vpop.trf.xlu1  ;;  %v891_v33 = vpop.trf.xlu0 }
 0x27c   : > { %1164 = vst [vmem:[%s1713_s18 + $0x708] sm:$0xff] %v923_v32  ;;  %1132 = vst [vmem:[%s1713_s18 + $0x608] sm:$0xff] %v891_v33 }
 0x27f   : > { %v924_v34 = vpop.trf.xlu1  ;;  %v892_v35 = vpop.trf.xlu0 }
 0x280   : > { %1166 = vst [vmem:[%s1713_s18 + $0x718] sm:$0xff] %v924_v34  ;;  %1134 = vst [vmem:[%s1713_s18 + $0x618] sm:$0xff] %v892_v35 }
 0x283   : > { %v925_v36 = vpop.trf.xlu1  ;;  %v893_v37 = vpop.trf.xlu0 }
 0x284   : > { %1168 = vst [vmem:[%s1713_s18 + $0x728] sm:$0xff] %v925_v36  ;;  %1136 = vst [vmem:[%s1713_s18 + $0x628] sm:$0xff] %v893_v37 }
 0x287   : > { %v926_v38 = vpop.trf.xlu1  ;;  %v894_v39 = vpop.trf.xlu0 }
 0x288   : > { %1170 = vst [vmem:[%s1713_s18 + $0x738] sm:$0xff] %v926_v38  ;;  %1138 = vst [vmem:[%s1713_s18 + $0x638] sm:$0xff] %v894_v39 }
 0x28b   : > { %v927_v40 = vpop.trf.xlu1  ;;  %v895_v41 = vpop.trf.xlu0 }
 0x28c   : > { %1172 = vst [vmem:[%s1713_s18 + $0x748] sm:$0xff] %v927_v40  ;;  %1140 = vst [vmem:[%s1713_s18 + $0x648] sm:$0xff] %v895_v41 }
 0x28f   : > { %v928_v42 = vpop.trf.xlu1  ;;  %v896_v43 = vpop.trf.xlu0 }
 0x290   : > { %1174 = vst [vmem:[%s1713_s18 + $0x758] sm:$0xff] %v928_v42  ;;  %1142 = vst [vmem:[%s1713_s18 + $0x658] sm:$0xff] %v896_v43 }
 0x293   : > { %v929_v44 = vpop.trf.xlu1  ;;  %v897_v45 = vpop.trf.xlu0 }
 0x294   : > { %1176 = vst [vmem:[%s1713_s18 + $0x768] sm:$0xff] %v929_v44  ;;  %1144 = vst [vmem:[%s1713_s18 + $0x668] sm:$0xff] %v897_v45 }
 0x297   : > { %v930_v46 = vpop.trf.xlu1  ;;  %v898_v47 = vpop.trf.xlu0 }
 0x298   : > { %1178 = vst [vmem:[%s1713_s18 + $0x778] sm:$0xff] %v930_v46  ;;  %1146 = vst [vmem:[%s1713_s18 + $0x678] sm:$0xff] %v898_v47 }
 0x29b   : > { %v931_v48 = vpop.trf.xlu1  ;;  %v899_v49 = vpop.trf.xlu0 }
 0x29c   : > { %1180 = vst [vmem:[%s1713_s18 + $0x788] sm:$0xff] %v931_v48  ;;  %1148 = vst [vmem:[%s1713_s18 + $0x688] sm:$0xff] %v899_v49 }
 0x29f   : > { %v932_v50 = vpop.trf.xlu1  ;;  %v900_v51 = vpop.trf.xlu0 }
 0x2a0   : > { %1182 = vst [vmem:[%s1713_s18 + $0x798] sm:$0xff] %v932_v50  ;;  %1150 = vst [vmem:[%s1713_s18 + $0x698] sm:$0xff] %v900_v51 }
 0x2a3   : > { %v933_v52 = vpop.trf.xlu1  ;;  %v901_v53 = vpop.trf.xlu0 }
 0x2a4   : > { %1184 = vst [vmem:[%s1713_s18 + $0x7a8] sm:$0xff] %v933_v52  ;;  %1152 = vst [vmem:[%s1713_s18 + $0x6a8] sm:$0xff] %v901_v53 }
 0x2a7   : > { %v934_v54 = vpop.trf.xlu1  ;;  %v902_v55 = vpop.trf.xlu0 }
 0x2a8   : > { %1186 = vst [vmem:[%s1713_s18 + $0x7b8] sm:$0xff] %v934_v54  ;;  %1154 = vst [vmem:[%s1713_s18 + $0x6b8] sm:$0xff] %v902_v55 }
 0x2ab   : > { %v935_v56 = vpop.trf.xlu1  ;;  %v903_v57 = vpop.trf.xlu0 }
 0x2ac   : > { %1188 = vst [vmem:[%s1713_s18 + $0x7c8] sm:$0xff] %v935_v56  ;;  %1156 = vst [vmem:[%s1713_s18 + $0x6c8] sm:$0xff] %v903_v57 }
 0x2af   : > { %v936_v58 = vpop.trf.xlu1  ;;  %v904_v59 = vpop.trf.xlu0 }
 0x2b0   : > { %1190 = vst [vmem:[%s1713_s18 + $0x7d8] sm:$0xff] %v936_v58  ;;  %1158 = vst [vmem:[%s1713_s18 + $0x6d8] sm:$0xff] %v904_v59 }
 0x2b3   : > { %v937_v60 = vpop.trf.xlu1  ;;  %v905_v61 = vpop.trf.xlu0 }
 0x2b4   : > { %1192 = vst [vmem:[%s1713_s18 + $0x7e8] sm:$0xff] %v937_v60  ;;  %1160 = vst [vmem:[%s1713_s18 + $0x6e8] sm:$0xff] %v905_v61 }
 0x2b7   : > { %v938_v62 = vpop.trf.xlu1  ;;  %v906_v63 = vpop.trf.xlu0 }
 0x2b8   : > { %1194 = vst [vmem:[%s1713_s18 + $0x7f8] sm:$0xff] %v938_v62  ;;  %1162 = vst [vmem:[%s1713_s18 + $0x6f8] sm:$0xff] %v906_v63 }
 0x2b9   : > { %1434 = shalt.err (!%p1431_p5)
}
 0x2ba   : > { %s1435_s17 = scalar_lea.hbm %s2164_s5, 32768  ;;  %s1439_s24 = scalar_lea.hbm %s2218_s1, 65536 }
 0x2bb   : > { %p1436_p4 = scmp.ne.s32.totalorder %s2164_s5, %s1435_s17  ;;  %p1440_p12 = scmp.lt.u32.totalorder %s2164_s5, %s2218_s1 }
 0x2bc   : > { %p1441_p1 = scmp.lt.u32.totalorder %s1439_s24, %s1435_s17  ;;  %p1443_p8 = scmp.lt.u32.totalorder %s1435_s17, %s2164_s5 }
 0x2bd   : > { %p1437_p7 = pnand %p1436_p4, %p2226_p9 }
 0x2be   : > { %p1442_p3 = por %p1441_p1, %p1440_p12 }
 0x2bf   : > { %p1438_p10 = pneg %p1437_p7 }
 0x2c0   : > { %p1444_p11 = por %p1443_p8, %p1442_p3 }
 0x2c2   : > { %p1445_p0 = pnand %p1444_p11, %p1438_p10 }
 0x2c4   : > { %1448 = shalt.err (!%p1445_p0)
}
 0x2c5   : > { %s1509_s3 = smov 256   ;;  %s1510_s4 = smov 16  }
 0x2c6   : > { %1327 = dma.vmem_to_hbm [thread:$0]  (%p2226_p9), %s2166_s29, 32768, %s2164_s5, %s1196_s9, %s1509_s3, %s1509_s3, %s1510_s4  }
 0x2c7 PF: > { %s1229_s18 = sand.u32 1, %s1483_s6   ;;  %p2227_p6 = scmp.ne.s32.totalorder %s2223_s21, 0 }
 0x2c8   : > { %p2228_p13 = scmp.ge.s32.totalorder %s1503_s11, 2  ;;  %s1230_s27 = scalar_lea.sflag [#allocation4], %s1229_s18 }
 0x2ca   : > { %p1334_p2 = pnand %p2228_p13, %p2227_p6 }
 0x2cc   : > { %1478 = dma.done.wait (!%p1334_p2), %s1230_s27, 32768  }
 0x2cd   : > { %1480 = vsyncadd (!%p1334_p2), %s1230_s27, 4294934528  ;;  %s17_s11 = sadd.s32 1, %s1503_s11   ;;  %s2229_s6 = smov %s1487_s7 }
 0x2ce   : > { %p14_p5 = scmp.ge.s32.totalorder %s17_s11, 4   ;;  %s2230_s7 = smov %s1491_s8 }
 0x2cf   : > { %s2231_s8 = smov %s1577_s20  ;;  %s2232_s9 = smov %s1499_s10 }
 0x2d0   : > { %s2233_s10 = smov %s2235_s14  ;;  %16 = sbr.rel (!%p14_p5) target bundleno = 6 (0x6), region = 69 }
 0x2d7   :  { %1235 = vsyncpa [#allocation3], 1 }
 0x2d8   :  { %1237 = vsyncpa [#allocation3 + $0x1], 1 }
 0x2d9   :  { %1238 = vsyncpa [#allocation4], 1 }
 0x2da   :  { %1240 = vsyncpa [#allocation4 + $0x1], 1 }

</bundles_post_ra>
